<compile_context>
chip_gen: v5e
topology: v5e:2x2
jax: 0.10.0
libtpu: 0.0.40
codegen_flags: <defaults>
</compile_context>

<pallas_src>
import functools

import jax
import jax.numpy as jnp
from jax.experimental import pallas as pl
from jax.experimental.pallas import tpu as pltpu  # noqa: F401  (TPU backend)


# ----------------------------------------------------------------------------
# Config (mirrors the PyTorch config the module expects)
# ----------------------------------------------------------------------------
class Config:
    img_size = 16
    z_dim_geo = 4
    conv_layers_geo = 4
    channels_geo = [4, 8, 8, 4]      # channels_geo[-1] = input image channels
    kernel_sizes_geo = [3, 3, 3, 3]
    strides_geo = [2, 2, 2, 2]
    pads_geo = [1, 1, 1, 1]


# ----------------------------------------------------------------------------
# Raw parameter init (mirrors the PyTorch __init__ layer shapes)
# ----------------------------------------------------------------------------
def init_raw_params(cfg, key):
    conv = []
    L = cfg.conv_layers_geo
    for i in range(L):
        cin = cfg.channels_geo[L - 1 - i]
        cout = (cfg.channels_geo[L - 2 - i] if i != L - 1
                else cfg.channels_geo[-1] * 2)
        k = cfg.kernel_sizes_geo[i]
        key, k1, k2 = jax.random.split(key, 3)
        w = jax.random.normal(k1, (cout, cin, k, k), jnp.float32) * 0.2
        b = jax.random.normal(k2, (cout,), jnp.float32) * 0.1
        conv.append((w, b, k, cfg.strides_geo[i], cfg.pads_geo[i]))
    fc_in = (cfg.img_size // 16) * (cfg.img_size // 16) * cfg.channels_geo[0] * 2
    fc_out = 2 * cfg.z_dim_geo
    key, k1, k2 = jax.random.split(key, 3)
    w_fc = jax.random.normal(k1, (fc_out, fc_in), jnp.float32) * 0.2
    b_fc = jax.random.normal(k2, (fc_out,), jnp.float32) * 0.1
    return conv, (w_fc, b_fc)


# ----------------------------------------------------------------------------
# One-time parameter preprocessing (hoisted entirely out of the forward graph)
# ----------------------------------------------------------------------------
def conv_to_dense(w, b, stride, pad, in_chw):
    """Fold a conv layer into a dense matrix on NCHW-flattened activations."""
    cin, hin, win = in_chw
    n_in = cin * hin * win
    eye = jnp.eye(n_in, dtype=jnp.float32).reshape(n_in, cin, hin, win)
    out = jax.lax.conv_general_dilated(
        eye, w.astype(jnp.float32),
        window_strides=(stride, stride),
        padding=((pad, pad), (pad, pad)),
        dimension_numbers=("NCHW", "OIHW", "NCHW"),
        precision=jax.lax.Precision.HIGHEST)
    _, cout, ho, wo = out.shape
    m = out.reshape(n_in, cout * ho * wo)                    # x_flat @ m = conv(x)_flat
    b_flat = jnp.repeat(b.astype(jnp.float32), ho * wo).reshape(1, cout * ho * wo)
    return m, b_flat, (cout, ho, wo)


def prepare_params(cfg, raw_conv, raw_fc):
    chw = (cfg.channels_geo[-1], cfg.img_size, cfg.img_size)
    mats, acts = [], []
    for i, (w, b, k, s, p) in enumerate(raw_conv):
        m, bf, chw = conv_to_dense(w, b, s, p, chw)
        mats.append((m, bf))
        acts.append("sigmoid" if i == len(raw_conv) - 1 else "relu")

    # FC: y = x @ w_fc.T + b_fc ; permute output columns so the kernel emits
    # [mu_0..mu_{z-1}, logsigma_0..logsigma_{z-1}] contiguously.
    w_fc, b_fc = raw_fc
    z = cfg.z_dim_geo
    perm = jnp.asarray(list(range(0, 2 * z, 2)) + list(range(1, 2 * z, 2)),
                       jnp.int32)
    mats.append((w_fc.T[:, perm].astype(jnp.float32),
                 b_fc[perm].reshape(1, 2 * z).astype(jnp.float32)))
    acts.append("relu")
    return mats, tuple(acts)


# ----------------------------------------------------------------------------
# Fused Pallas kernel: whole encoder forward, everything VMEM resident
# ----------------------------------------------------------------------------
def _fused_encoder_kernel(acts, *refs):
    x_ref = refs[0]
    o_ref = refs[-1]
    h = x_ref[...]                                    # (8, n_in); row 0 is real
    for i, act in enumerate(acts):                    # statically unrolled
        m = refs[1 + 2 * i][...]
        b = refs[2 + 2 * i][...]
        h = jnp.dot(h, m, preferred_element_type=jnp.float32) + b
        if act == "relu":
            h = jnp.maximum(h, 0.0)
        else:  # sigmoid: exp on EUP + approx reciprocal (EUP slot, VALU-free)
            h = pl.reciprocal(1.0 + jnp.exp(-h), approx=True)
    o_ref[...] = h[0:1, :].astype(o_ref.dtype)        # (1, 2*z_dim) = [mu|logsigma]


def encoder_geometry_forward(img_nchw, mats, acts, z_dim):
    # PyTorch flattens the conv output with .view(-1) -> batch must be 1.
    flat = img_nchw.reshape(1, -1).astype(jnp.float32)      # NCHW flatten
    x = jnp.pad(flat, ((0, 7), (0, 0)))                     # (8, n_in) sublane-aligned

    operands = [x]
    in_specs = [pl.BlockSpec(x.shape, lambda: (0, 0))]
    for m, b in mats:
        operands += [m, b]
        in_specs += [pl.BlockSpec(m.shape, lambda: (0, 0)),
                     pl.BlockSpec(b.shape, lambda: (0, 0))]

    out = pl.pallas_call(
        functools.partial(_fused_encoder_kernel, acts),
        out_shape=jax.ShapeDtypeStruct((1, 2 * z_dim), jnp.float32),
        in_specs=in_specs,
        out_specs=pl.BlockSpec((1, 2 * z_dim), lambda: (0, 0)),
    )(*operands)

    # TODO(synk): reference PyTorch does `out[:, 0]` on a 1-D fc output (ill-
    # formed); we interpret the fc output as (z_dim, 2) -> cols = (mu, logsigma).
    mu = out[0, :z_dim]
    logsigma = out[0, z_dim:]
    return mu, logsigma


# ----------------------------------------------------------------------------
# Pure-JAX reference (for correctness check only)
# ----------------------------------------------------------------------------
def reference_forward(img_nchw, raw_conv, raw_fc, z_dim):
    x = img_nchw.astype(jnp.float32)
    for i, (w, b, k, s, p) in enumerate(raw_conv):
        x = jax.lax.conv_general_dilated(
            x, w, (s, s), ((p, p), (p, p)),
            dimension_numbers=("NCHW", "OIHW", "NCHW"),
            precision=jax.lax.Precision.HIGHEST)
        x = x + b.reshape(1, -1, 1, 1)
        x = jax.nn.sigmoid(x) if i == len(raw_conv) - 1 else jnp.maximum(x, 0.0)
    w_fc, b_fc = raw_fc
    fc = jnp.maximum(w_fc @ x.reshape(-1) + b_fc, 0.0)
    out = fc.reshape(z_dim, 2)
    return out[:, 0], out[:, 1]


# ----------------------------------------------------------------------------
if __name__ == "__main__":
    cfg = Config()
    key = jax.random.PRNGKey(0)
    key, pkey, xkey = jax.random.split(key, 3)

    raw_conv, raw_fc = init_raw_params(cfg, pkey)
    mats, acts = prepare_params(cfg, raw_conv, raw_fc)

    # Input: batch=1 (forced by .view(-1)), channels_geo[-1]=4, spatial 16x16.
    img = jax.random.normal(
        xkey, (1, cfg.channels_geo[-1], cfg.img_size, cfg.img_size), jnp.float32)

    fwd = jax.jit(functools.partial(encoder_geometry_forward,
                                    acts=acts, z_dim=cfg.z_dim_geo))
    mu, logsigma = fwd(img, mats)
    jax.block_until_ready((mu, logsigma))

    assert mu.shape == (cfg.z_dim_geo,) and logsigma.shape == (cfg.z_dim_geo,)
    assert bool(jnp.all(jnp.isfinite(mu))) and bool(jnp.all(jnp.isfinite(logsigma)))

    mu_ref, ls_ref = reference_forward(img, raw_conv, raw_fc, cfg.z_dim_geo)
    assert jnp.allclose(mu, mu_ref, atol=1e-2, rtol=1e-2)
    assert jnp.allclose(logsigma, ls_ref, atol=1e-2, rtol=1e-2)

    print("KERNEL_OK")
</pallas_src>

<mosaic_0001>
module attributes {stable_mosaic.version = 11 : i64} {
  func.func @_fused_encoder_kernel(%arg0: memref<8x1024xf32, #tpu.memory_space<vmem>>, %arg1: memref<1024x512xf32, #tpu.memory_space<vmem>>, %arg2: memref<1x512xf32, #tpu.memory_space<vmem>>, %arg3: memref<512x128xf32, #tpu.memory_space<vmem>>, %arg4: memref<1x128xf32, #tpu.memory_space<vmem>>, %arg5: memref<128x16xf32, #tpu.memory_space<vmem>>, %arg6: memref<1x16xf32, #tpu.memory_space<vmem>>, %arg7: memref<16x8xf32, #tpu.memory_space<vmem>>, %arg8: memref<1x8xf32, #tpu.memory_space<vmem>>, %arg9: memref<8x8xf32, #tpu.memory_space<vmem>>, %arg10: memref<1x8xf32, #tpu.memory_space<vmem>>, %arg11: memref<1x8xf32, #tpu.memory_space<vmem>>) attributes {dimension_semantics = [], scalar_prefetch = 0 : i64, scratch_operands = 0 : i64, tpu.core_type = #tpu.core_type<tc>} {
    %c0 = arith.constant 0 : index
    %c0_0 = arith.constant 0 : index
    %0 = vector.load %arg0[%c0, %c0_0] : memref<8x1024xf32, #tpu.memory_space<vmem>>, vector<8x1024xf32>
    %c0_1 = arith.constant 0 : index
    %c0_2 = arith.constant 0 : index
    %1 = vector.load %arg1[%c0_1, %c0_2] : memref<1024x512xf32, #tpu.memory_space<vmem>>, vector<1024x512xf32>
    %c0_3 = arith.constant 0 : index
    %c0_4 = arith.constant 0 : index
    %2 = vector.load %arg2[%c0_3, %c0_4] : memref<1x512xf32, #tpu.memory_space<vmem>>, vector<1x512xf32>
    %cst = arith.constant dense<0.000000e+00> : vector<8x512xf32>
    %3 = tpu.matmul %0, %1, %cst {dimension_numbers = #tpu.dot_dimension_numbers<[1], [0], [0], [1], [0, 0, 1, 1], [], []>} : vector<8x1024xf32>, vector<1024x512xf32>, vector<8x512xf32> -> vector<8x512xf32>
    %4 = vector.broadcast %2 : vector<1x512xf32> to vector<8x512xf32>
    %5 = arith.addf %3, %4 : vector<8x512xf32>
    %cst_5 = arith.constant 0.000000e+00 : f32
    %6 = vector.broadcast %cst_5 : f32 to vector<8x512xf32>
    %7 = arith.maximumf %5, %6 : vector<8x512xf32>
    %c0_6 = arith.constant 0 : index
    %c0_7 = arith.constant 0 : index
    %8 = vector.load %arg3[%c0_6, %c0_7] : memref<512x128xf32, #tpu.memory_space<vmem>>, vector<512x128xf32>
    %c0_8 = arith.constant 0 : index
    %c0_9 = arith.constant 0 : index
    %9 = vector.load %arg4[%c0_8, %c0_9] : memref<1x128xf32, #tpu.memory_space<vmem>>, vector<1x128xf32>
    %cst_10 = arith.constant dense<0.000000e+00> : vector<8x128xf32>
    %10 = tpu.matmul %7, %8, %cst_10 {dimension_numbers = #tpu.dot_dimension_numbers<[1], [0], [0], [1], [0, 0, 1, 1], [], []>} : vector<8x512xf32>, vector<512x128xf32>, vector<8x128xf32> -> vector<8x128xf32>
    %11 = vector.broadcast %9 : vector<1x128xf32> to vector<8x128xf32>
    %12 = arith.addf %10, %11 : vector<8x128xf32>
    %cst_11 = arith.constant 0.000000e+00 : f32
    %13 = vector.broadcast %cst_11 : f32 to vector<8x128xf32>
    %14 = arith.maximumf %12, %13 : vector<8x128xf32>
    %c0_12 = arith.constant 0 : index
    %c0_13 = arith.constant 0 : index
    %15 = vector.load %arg5[%c0_12, %c0_13] : memref<128x16xf32, #tpu.memory_space<vmem>>, vector<128x16xf32>
    %c0_14 = arith.constant 0 : index
    %c0_15 = arith.constant 0 : index
    %16 = vector.load %arg6[%c0_14, %c0_15] : memref<1x16xf32, #tpu.memory_space<vmem>>, vector<1x16xf32>
    %cst_16 = arith.constant dense<0.000000e+00> : vector<8x16xf32>
    %17 = tpu.matmul %14, %15, %cst_16 {dimension_numbers = #tpu.dot_dimension_numbers<[1], [0], [0], [1], [0, 0, 1, 1], [], []>} : vector<8x128xf32>, vector<128x16xf32>, vector<8x16xf32> -> vector<8x16xf32>
    %18 = vector.broadcast %16 : vector<1x16xf32> to vector<8x16xf32>
    %19 = arith.addf %17, %18 : vector<8x16xf32>
    %cst_17 = arith.constant 0.000000e+00 : f32
    %20 = vector.broadcast %cst_17 : f32 to vector<8x16xf32>
    %21 = arith.maximumf %19, %20 : vector<8x16xf32>
    %c0_18 = arith.constant 0 : index
    %c0_19 = arith.constant 0 : index
    %22 = vector.load %arg7[%c0_18, %c0_19] : memref<16x8xf32, #tpu.memory_space<vmem>>, vector<16x8xf32>
    %c0_20 = arith.constant 0 : index
    %c0_21 = arith.constant 0 : index
    %23 = vector.load %arg8[%c0_20, %c0_21] : memref<1x8xf32, #tpu.memory_space<vmem>>, vector<1x8xf32>
    %cst_22 = arith.constant dense<0.000000e+00> : vector<8x8xf32>
    %24 = tpu.matmul %21, %22, %cst_22 {dimension_numbers = #tpu.dot_dimension_numbers<[1], [0], [0], [1], [0, 0, 1, 1], [], []>} : vector<8x16xf32>, vector<16x8xf32>, vector<8x8xf32> -> vector<8x8xf32>
    %25 = vector.broadcast %23 : vector<1x8xf32> to vector<8x8xf32>
    %26 = arith.addf %24, %25 : vector<8x8xf32>
    %cst_23 = arith.constant 0.000000e+00 : f32
    %27 = vector.broadcast %cst_23 : f32 to vector<8x8xf32>
    %28 = arith.subf %27, %26 : vector<8x8xf32>
    %29 = math.exp %28 : vector<8x8xf32>
    %cst_24 = arith.constant 1.000000e+00 : f32
    %30 = vector.broadcast %cst_24 : f32 to vector<8x8xf32>
    %31 = arith.addf %30, %29 : vector<8x8xf32>
    %32 = tpu.reciprocal %31 {approx = true} : vector<8x8xf32> -> vector<8x8xf32>
    %c0_25 = arith.constant 0 : index
    %c0_26 = arith.constant 0 : index
    %33 = vector.load %arg9[%c0_25, %c0_26] : memref<8x8xf32, #tpu.memory_space<vmem>>, vector<8x8xf32>
    %c0_27 = arith.constant 0 : index
    %c0_28 = arith.constant 0 : index
    %34 = vector.load %arg10[%c0_27, %c0_28] : memref<1x8xf32, #tpu.memory_space<vmem>>, vector<1x8xf32>
    %cst_29 = arith.constant dense<0.000000e+00> : vector<8x8xf32>
    %35 = tpu.matmul %32, %33, %cst_29 {dimension_numbers = #tpu.dot_dimension_numbers<[1], [0], [0], [1], [0, 0, 1, 1], [], []>} : vector<8x8xf32>, vector<8x8xf32>, vector<8x8xf32> -> vector<8x8xf32>
    %36 = vector.broadcast %34 : vector<1x8xf32> to vector<8x8xf32>
    %37 = arith.addf %35, %36 : vector<8x8xf32>
    %cst_30 = arith.constant 0.000000e+00 : f32
    %38 = vector.broadcast %cst_30 : f32 to vector<8x8xf32>
    %39 = arith.maximumf %37, %38 : vector<8x8xf32>
    %40 = vector.extract_strided_slice %39 {offsets = [0, 0], sizes = [1, 8], strides = [1, 1]} : vector<8x8xf32> to vector<1x8xf32>
    %c0_31 = arith.constant 0 : index
    %c0_32 = arith.constant 0 : index
    %41 = vector.load %arg11[%c0_31, %c0_32] : memref<1x8xf32, #tpu.memory_space<vmem>>, vector<1x8xf32>
    tpu.vector_store %arg11[%c0_31, %c0_32], %40 {strides = array<i32>} : memref<1x8xf32, #tpu.memory_space<vmem>>, vector<1x8xf32>,
    return
  }
}

</mosaic_0001>

<bundles_post_ra>
// kernel: encoder_geometry_forward.1
= control target key start
LH: loop header
LB: loop body
LE: loop exit
PB: predicated region body
PF: predicated region fallthrough
CT: control target
= control target key end

     0   :  { %16 = vsyncpa [#allocation3], 0  ;;  %s2100_s0 = inlined_call_operand.vmem [shape: f32[8,1024], index: 0, kind: input, shape index: {}]   ;;  %s2101_s1 = inlined_call_operand.hbm [shape: f32[1024,512], index: 1, kind: input, shape index: {}]   ;;  %s2102_s2 = inlined_call_operand.hbm [shape: f32[1,512], index: 2, kind: input, shape index: {}]   ;;  %s2103_s3 = inlined_call_operand.hbm [shape: f32[512,128], index: 3, kind: input, shape index: {}]   ;;  %s2104_s4 = inlined_call_operand.hbm [shape: f32[1,128], index: 4, kind: input, shape index: {}]   ;;  %s2105_s5 = inlined_call_operand.vmem [shape: f32[128,16], index: 5, kind: input, shape index: {}]   ;;  %s2106_s6 = inlined_call_operand.hbm [shape: f32[1,16], index: 6, kind: input, shape index: {}]   ;;  %s2107_s7 = inlined_call_operand.vmem [shape: f32[16,8], index: 7, kind: input, shape index: {}]   ;;  %s2108_s8 = inlined_call_operand.hbm [shape: f32[1,8], index: 8, kind: input, shape index: {}]   ;;  %s2109_s9 = inlined_call_operand.hbm [shape: f32[8,8], index: 9, kind: input, shape index: {}]   ;;  %s2110_s10 = inlined_call_operand.hbm [shape: f32[1,8], index: 10, kind: input, shape index: {}]   ;;  %s2111_s11 = inlined_call_operand.vmem [shape: f32[1,8], index: 11, kind: output, shape index: {}]  }
   0x1   :  { %17 = vsyncpa [#allocation5], 0 }
   0x2   :  { %18 = vsyncpa [#allocation8], 0 }
   0x3   :  { %19 = vsyncpa [#allocation11], 0  ;;  %s41_s19 = sshll.u32 %s2102_s2, 4  ;;  %s42_s19 = int_to_ptr.hbm [resolvable:$true] %s41_s19 }
   0x4   :  { %20 = vsyncpa [#allocation14], 0  ;;  %s1823_s20 = smov [#allocation4]   ;;  %s65_s24 = sshll.u32 %s2104_s4, 4  ;;  %s66_s24 = int_to_ptr.hbm [resolvable:$true] %s65_s24 }
   0x5   :  { %s43_s21 = sshll.u32 %s1823_s20, 4  ;;  %s1824_s25 = smov [#allocation7]   ;;  %s44_s21 = int_to_ptr.vmem [resolvable:$true] %s43_s21 }
   0x6   :  { %46 = dma.hbm_to_vmem [thread:$0]  %s42_s19, 64, %s44_s21, [#allocation5]  }
   0x7   :  { %s67_s26 = sshll.u32 %s1824_s25, 4  ;;  %s91_s29 = sshll.u32 %s2108_s8, 4  ;;  %s68_s26 = int_to_ptr.vmem [resolvable:$true] %s67_s26  ;;  %s92_s29 = int_to_ptr.hbm [resolvable:$true] %s91_s29 }
   0x8   :  { %70 = dma.hbm_to_vmem [thread:$0]  %s66_s24, 16, %s68_s26, [#allocation8]  }
   0x9   :  { %s27_s12 = sshll.u32 %s2101_s1, 4  ;;  %s1825_s13 = smov [#allocation10]   ;;  %s28_s12 = int_to_ptr.hbm [resolvable:$true] %s27_s12 }
   0xa   :  { %s93_s14 = sshll.u32 %s1825_s13, 4  ;;  %s1826_s4 = smov [#allocation2]   ;;  %s94_s14 = int_to_ptr.vmem [resolvable:$true] %s93_s14 }
   0xb   :  { %96 = dma.hbm_to_vmem [thread:$0]  %s92_s29, 16, %s94_s14, [#allocation11]  }
   0xc   :  { %s29_s15 = sshll.u32 %s1826_s4, 4  ;;  %s1827_s16 = smov 512   ;;  %s30_s15 = int_to_ptr.vmem [resolvable:$true] %s29_s15 }
   0xd   :  { %s1828_s17 = smov 32   ;;  %s51_s19 = sshll.u32 %s2103_s3, 4  ;;  %s52_s19 = int_to_ptr.hbm [resolvable:$true] %s51_s19 }
   0xe   :  { %35 = dma.hbm_to_vmem [thread:$0]  %s28_s12, 65536, %s30_s15, [#allocation3], %s1827_s16, %s1827_s16, %s1828_s17  }
   0xf   :  { %s1829_s20 = smov [#allocation6]   ;;  %s78_s23 = sshll.u32 %s2106_s6, 4  ;;  %s79_s23 = int_to_ptr.hbm [resolvable:$true] %s78_s23 }
  0x10   :  { %s53_s21 = sshll.u32 %s1829_s20, 4  ;;  %s1830_s24 = smov 128   ;;  %s54_s21 = int_to_ptr.vmem [resolvable:$true] %s53_s21 }
  0x11   :  { %s1831_s25 = smov 8   ;;  %s1832_s26 = smov [#allocation9]  }
  0x12   :  { %59 = dma.hbm_to_vmem [thread:$0]  %s52_s19, 8192, %s54_s21, [#allocation5], %s1830_s24, %s1830_s24, %s1831_s25  }
  0x13   :  { %s80_s27 = sshll.u32 %s1832_s26, 4  ;;  %s102_s2 = sshll.u32 %s2109_s9, 4  ;;  %s81_s27 = int_to_ptr.vmem [resolvable:$true] %s80_s27  ;;  %s103_s2 = int_to_ptr.hbm [resolvable:$true] %s102_s2 }
  0x14   :  { %83 = dma.hbm_to_vmem [thread:$0]  %s79_s23, 16, %s81_s27, [#allocation8]  }
  0x15   :  { %s113_s12 = sshll.u32 %s2110_s10, 4  ;;  %s1833_s13 = smov [#allocation12]   ;;  %s114_s12 = int_to_ptr.hbm [resolvable:$true] %s113_s12 }
  0x16   :  { %s104_s14 = sshll.u32 %s1833_s13, 4  ;;  %s1834_s6 = smov [#allocation13]   ;;  %s105_s14 = int_to_ptr.vmem [resolvable:$true] %s104_s14 }
  0x17   :  { %107 = dma.hbm_to_vmem [thread:$0]  %s103_s2, 128, %s105_s14, [#allocation11]  }
  0x18   :  { %s115_s4 = sshll.u32 %s1834_s6, 4  ;;  %s116_s4 = int_to_ptr.vmem [resolvable:$true] %s115_s4 }
  0x19   :  { %118 = dma.hbm_to_vmem [thread:$0]  %s114_s12, 16, %s116_s4, [#allocation14]  }
  0x1a   :  { %1813 = dma.done.wait [#allocation3], 65536  }
  0x1b   :  { %1814 = vsyncadd [#allocation3], 4294901760 }
  0x1c   :  { %1815 = dma.done.wait [#allocation5], 8256  }
  0x1d   :  { %1816 = vsyncadd [#allocation5], 4294959040 }
  0x1e   :  { %1817 = dma.done.wait [#allocation8], 32  }
  0x1f   :  { %1818 = vsyncadd [#allocation8], 4294967264 }
  0x20   :  { %1819 = dma.done.wait [#allocation11], 144  }
  0x21   :  { %1820 = vsyncadd [#allocation11], 4294967152 }
  0x22   :  { %1821 = dma.done.wait [#allocation14], 16  }
  0x23   :  { %1822 = vsyncadd [#allocation14], 4294967280  ;;  %v219_v0 = vld [vmem:[#allocation2 + $0x1e0] sm:$0xff]  ;;  %vm1521_vm0 = vcmask 130048   ;;  %vm1555_vm1 = vcmask 64512   ;;  %vm1580_vm2 = vcmask 57344  }
  0x24   :  { %v283_v1 = vld [vmem:[#allocation2 + $0x3e0] sm:$0xff]  ;;  %681 = vmatpush.msra.mxu0 %v219_v0 }
  0x25   :  { %v347_v2 = vld [vmem:[#allocation2 + $0x5e0] sm:$0xff]  ;;  %701 = vmatpush.msra.mxu1 %v283_v1 }
  0x26   :  { %v215_v3 = vld [vmem:[#allocation2 + $0x1c0] sm:$0xff]  ;;  %721 = vmatpush.msra.mxu2 %v347_v2 }
  0x27   :  { %v279_v4 = vld [vmem:[#allocation2 + $0x3c0] sm:$0xff]  ;;  %682 = vmatpush.msra.mxu0 %v215_v3 }
  0x28   :  { %v343_v5 = vld [vmem:[#allocation2 + $0x5c0] sm:$0xff]  ;;  %702 = vmatpush.msra.mxu1 %v279_v4 }
  0x29   :  { %v411_v6 = vld [vmem:[#allocation2 + $0x7e0] sm:$0xff]  ;;  %722 = vmatpush.msra.mxu2 %v343_v5 }
  0x2a   :  { %v211_v7 = vld [vmem:[#allocation2 + $0x1a0] sm:$0xff]  ;;  %741 = vmatpush.msra.mxu3 %v411_v6 }
  0x2b   :  { %v275_v8 = vld [vmem:[#allocation2 + $0x3a0] sm:$0xff]  ;;  %683 = vmatpush.msra.mxu0 %v211_v7 }
  0x2c   :  { %v339_v9 = vld [vmem:[#allocation2 + $0x5a0] sm:$0xff]  ;;  %703 = vmatpush.msra.mxu1 %v275_v8 }
  0x2d   :  { %v407_v10 = vld [vmem:[#allocation2 + $0x7c0] sm:$0xff]  ;;  %723 = vmatpush.msra.mxu2 %v339_v9 }
  0x2e   :  { %v207_v11 = vld [vmem:[#allocation2 + $0x180] sm:$0xff]  ;;  %742 = vmatpush.msra.mxu3 %v407_v10 }
  0x2f   :  { %v271_v12 = vld [vmem:[#allocation2 + $0x380] sm:$0xff]  ;;  %684 = vmatpush.msra.mxu0 %v207_v11 }
  0x30   :  { %v335_v13 = vld [vmem:[#allocation2 + $0x580] sm:$0xff]  ;;  %704 = vmatpush.msra.mxu1 %v271_v12 }
  0x31   :  { %v403_v14 = vld [vmem:[#allocation2 + $0x7a0] sm:$0xff]  ;;  %724 = vmatpush.msra.mxu2 %v335_v13 }
  0x32   :  { %v203_v15 = vld [vmem:[#allocation2 + $0x160] sm:$0xff]  ;;  %743 = vmatpush.msra.mxu3 %v403_v14 }
  0x33   :  { %v267_v16 = vld [vmem:[#allocation2 + $0x360] sm:$0xff]  ;;  %685 = vmatpush.msra.mxu0 %v203_v15 }
  0x34   :  { %v331_v17 = vld [vmem:[#allocation2 + $0x560] sm:$0xff]  ;;  %705 = vmatpush.msra.mxu1 %v267_v16 }
  0x35   :  { %v399_v18 = vld [vmem:[#allocation2 + $0x780] sm:$0xff]  ;;  %725 = vmatpush.msra.mxu2 %v331_v17 }
  0x36   :  { %v199_v19 = vld [vmem:[#allocation2 + $0x140] sm:$0xff]  ;;  %744 = vmatpush.msra.mxu3 %v399_v18 }
  0x37   :  { %v263_v20 = vld [vmem:[#allocation2 + $0x340] sm:$0xff]  ;;  %686 = vmatpush.msra.mxu0 %v199_v19 }
  0x38   :  { %v327_v21 = vld [vmem:[#allocation2 + $0x540] sm:$0xff]  ;;  %706 = vmatpush.msra.mxu1 %v263_v20 }
  0x39   :  { %v395_v22 = vld [vmem:[#allocation2 + $0x760] sm:$0xff]  ;;  %726 = vmatpush.msra.mxu2 %v327_v21 }
  0x3a   :  { %v195_v23 = vld [vmem:[#allocation2 + $0x120] sm:$0xff]  ;;  %745 = vmatpush.msra.mxu3 %v395_v22 }
  0x3b   :  { %v259_v24 = vld [vmem:[#allocation2 + $0x320] sm:$0xff]  ;;  %687 = vmatpush.msra.mxu0 %v195_v23 }
  0x3c   :  { %v323_v25 = vld [vmem:[#allocation2 + $0x520] sm:$0xff]  ;;  %707 = vmatpush.msra.mxu1 %v259_v24 }
  0x3d   :  { %v391_v26 = vld [vmem:[#allocation2 + $0x740] sm:$0xff]  ;;  %727 = vmatpush.msra.mxu2 %v323_v25 }
  0x3e   :  { %v191_v27 = vld [vmem:[#allocation2 + $0x100] sm:$0xff]  ;;  %746 = vmatpush.msra.mxu3 %v391_v26 }
  0x3f   :  { %v255_v28 = vld [vmem:[#allocation2 + $0x300] sm:$0xff]  ;;  %688 = vmatpush.msra.mxu0 %v191_v27 }
  0x40   :  { %v319_v29 = vld [vmem:[#allocation2 + $0x500] sm:$0xff]  ;;  %708 = vmatpush.msra.mxu1 %v255_v28 }
  0x41   :  { %v387_v30 = vld [vmem:[#allocation2 + $0x720] sm:$0xff]  ;;  %728 = vmatpush.msra.mxu2 %v319_v29 }
  0x42   :  { %v187_v31 = vld [vmem:[#allocation2 + $0xe0] sm:$0xff]  ;;  %747 = vmatpush.msra.mxu3 %v387_v30 }
  0x43   :  { %v251_v32 = vld [vmem:[#allocation2 + $0x2e0] sm:$0xff]  ;;  %689 = vmatpush.msra.mxu0 %v187_v31 }
  0x44   :  { %v315_v33 = vld [vmem:[#allocation2 + $0x4e0] sm:$0xff]  ;;  %709 = vmatpush.msra.mxu1 %v251_v32 }
  0x45   :  { %v383_v34 = vld [vmem:[#allocation2 + $0x700] sm:$0xff]  ;;  %729 = vmatpush.msra.mxu2 %v315_v33 }
  0x46   :  { %v183_v35 = vld [vmem:[#allocation2 + $0xc0] sm:$0xff]  ;;  %748 = vmatpush.msra.mxu3 %v383_v34 }
  0x47   :  { %v247_v36 = vld [vmem:[#allocation2 + $0x2c0] sm:$0xff]  ;;  %690 = vmatpush.msra.mxu0 %v183_v35 }
  0x48   :  { %v311_v37 = vld [vmem:[#allocation2 + $0x4c0] sm:$0xff]  ;;  %710 = vmatpush.msra.mxu1 %v247_v36 }
  0x49   :  { %v379_v38 = vld [vmem:[#allocation2 + $0x6e0] sm:$0xff]  ;;  %730 = vmatpush.msra.mxu2 %v311_v37 }
  0x4a   :  { %v179_v39 = vld [vmem:[#allocation2 + $0xa0] sm:$0xff]  ;;  %749 = vmatpush.msra.mxu3 %v379_v38 }
  0x4b   :  { %v243_v40 = vld [vmem:[#allocation2 + $0x2a0] sm:$0xff]  ;;  %691 = vmatpush.msra.mxu0 %v179_v39 }
  0x4c   :  { %v307_v41 = vld [vmem:[#allocation2 + $0x4a0] sm:$0xff]  ;;  %711 = vmatpush.msra.mxu1 %v243_v40 }
  0x4d   :  { %v375_v42 = vld [vmem:[#allocation2 + $0x6c0] sm:$0xff]  ;;  %731 = vmatpush.msra.mxu2 %v307_v41 }
  0x4e   :  { %v175_v43 = vld [vmem:[#allocation2 + $0x80] sm:$0xff]  ;;  %750 = vmatpush.msra.mxu3 %v375_v42 }
  0x4f   :  { %v239_v44 = vld [vmem:[#allocation2 + $0x280] sm:$0xff]  ;;  %692 = vmatpush.msra.mxu0 %v175_v43 }
  0x50   :  { %v303_v45 = vld [vmem:[#allocation2 + $0x480] sm:$0xff]  ;;  %712 = vmatpush.msra.mxu1 %v239_v44 }
  0x51   :  { %v371_v46 = vld [vmem:[#allocation2 + $0x6a0] sm:$0xff]  ;;  %732 = vmatpush.msra.mxu2 %v303_v45 }
  0x52   :  { %v171_v47 = vld [vmem:[#allocation2 + $0x60] sm:$0xff]  ;;  %751 = vmatpush.msra.mxu3 %v371_v46 }
  0x53   :  { %v235_v48 = vld [vmem:[#allocation2 + $0x260] sm:$0xff]  ;;  %693 = vmatpush.msra.mxu0 %v171_v47 }
  0x54   :  { %v299_v49 = vld [vmem:[#allocation2 + $0x460] sm:$0xff]  ;;  %713 = vmatpush.msra.mxu1 %v235_v48 }
  0x55   :  { %v367_v50 = vld [vmem:[#allocation2 + $0x680] sm:$0xff]  ;;  %733 = vmatpush.msra.mxu2 %v299_v49 }
  0x56   :  { %v167_v51 = vld [vmem:[#allocation2 + $0x40] sm:$0xff]  ;;  %752 = vmatpush.msra.mxu3 %v367_v50 }
  0x57   :  { %v231_v52 = vld [vmem:[#allocation2 + $0x240] sm:$0xff]  ;;  %694 = vmatpush.msra.mxu0 %v167_v51 }
  0x58   :  { %v295_v53 = vld [vmem:[#allocation2 + $0x440] sm:$0xff]  ;;  %714 = vmatpush.msra.mxu1 %v231_v52 }
  0x59   :  { %v363_v54 = vld [vmem:[#allocation2 + $0x660] sm:$0xff]  ;;  %734 = vmatpush.msra.mxu2 %v295_v53 }
  0x5a   :  { %v163_v55 = vld [vmem:[#allocation2 + $0x20] sm:$0xff]  ;;  %753 = vmatpush.msra.mxu3 %v363_v54 }
  0x5b   :  { %v227_v56 = vld [vmem:[#allocation2 + $0x220] sm:$0xff]  ;;  %695 = vmatpush.msra.mxu0 %v163_v55 }
  0x5c   :  { %v291_v57 = vld [vmem:[#allocation2 + $0x420] sm:$0xff]  ;;  %715 = vmatpush.msra.mxu1 %v227_v56 }
  0x5d   :  { %v359_v58 = vld [vmem:[#allocation2 + $0x640] sm:$0xff]  ;;  %735 = vmatpush.msra.mxu2 %v291_v57 }
  0x5e   :  { %v159_v59 = vld [vmem:[#allocation2] sm:$0xff]  ;;  %754 = vmatpush.msra.mxu3 %v359_v58 }
  0x5f   :  { %v223_v60 = vld [vmem:[#allocation2 + $0x200] sm:$0xff]  ;;  %696 = vmatpush.msra.mxu0 %v159_v59 }
  0x60   :  { %v287_v61 = vld [vmem:[#allocation2 + $0x400] sm:$0xff]  ;;  %716 = vmatpush.msra.mxu1 %v223_v60 }
  0x61   :  { %v355_v62 = vld [vmem:[#allocation2 + $0x620] sm:$0xff]  ;;  %736 = vmatpush.msra.mxu2 %v287_v61 }
  0x62   :  { %v475_v63 = vld [vmem:[#allocation2 + $0x9e0] sm:$0xff]  ;;  %755 = vmatpush.msra.mxu3 %v355_v62 }
  0x63   :  { %v539_v0 = vld [vmem:[#allocation2 + $0xbe0] sm:$0xff]  ;;  %761 = vmatpush.msrb.mxu0 %v475_v63 }
  0x64   :  { %v603_v1 = vld [vmem:[#allocation2 + $0xde0] sm:$0xff]  ;;  %781 = vmatpush.msrb.mxu1 %v539_v0  ;;  %v1927_v0 = vld [vmem:[%s2100_s0 + $0x8] sm:$0xff] }
  0x65   :  { %v351_v2 = vld [vmem:[#allocation2 + $0x600] sm:$0xff]  ;;  %801 = vmatpush.msrb.mxu2 %v603_v1  ;;  %v1932_v1 = vld [vmem:[%s2100_s0 + $0x10] sm:$0xff]  ;;  %717 = vmatmul.f32.vlgmr.msra.gmra.mxu1 %v1927_v0 }
  0x66   :  { %v471_v3 = vld [vmem:[#allocation2 + $0x9c0] sm:$0xff]  ;;  %756 = vmatpush.msra.mxu3 %v351_v2  ;;  %v220_v2 = vld [vmem:[#allocation2 + $0x1e8] sm:$0xff]  ;;  %737 = vmatmul.f32.vlgmr.msra.gmra.mxu2 %v1932_v1 }
  0x67   :  { %v535_v4 = vld [vmem:[#allocation2 + $0xbc0] sm:$0xff]  ;;  %762 = vmatpush.msrb.mxu0 %v471_v3  ;;  %v284_v3 = vld [vmem:[#allocation2 + $0x3e8] sm:$0xff] }
  0x68   :  { %v599_v5 = vld [vmem:[#allocation2 + $0xdc0] sm:$0xff]  ;;  %782 = vmatpush.msrb.mxu1 %v535_v4  ;;  %v348_v4 = vld [vmem:[#allocation2 + $0x5e8] sm:$0xff] }
  0x69   :  { %v667_v6 = vld [vmem:[#allocation2 + $0xfe0] sm:$0xff]  ;;  %802 = vmatpush.msrb.mxu2 %v599_v5 }
  0x6a   :  { %v467_v7 = vld [vmem:[#allocation2 + $0x9a0] sm:$0xff]  ;;  %821 = vmatpush.msrb.mxu3 %v667_v6  ;;  %v216_v6 = vld [vmem:[#allocation2 + $0x1c8] sm:$0xff] }
  0x6b   :  { %v531_v8 = vld [vmem:[#allocation2 + $0xba0] sm:$0xff]  ;;  %763 = vmatpush.msrb.mxu0 %v467_v7  ;;  %v1940_v7 = vld [vmem:[%s2100_s0 + $0x18] sm:$0xff] }
  0x6c   :  { %v595_v9 = vld [vmem:[#allocation2 + $0xda0] sm:$0xff]  ;;  %783 = vmatpush.msrb.mxu1 %v531_v8  ;;  %v280_v8 = vld [vmem:[#allocation2 + $0x3c8] sm:$0xff]  ;;  %757 = vmatmul.f32.vlgmr.msra.gmra.mxu3 %v1940_v7 }
  0x6d   :  { %v663_v10 = vld [vmem:[#allocation2 + $0xfc0] sm:$0xff]  ;;  %803 = vmatpush.msrb.mxu2 %v595_v9  ;;  %v344_v9 = vld [vmem:[#allocation2 + $0x5c8] sm:$0xff] }
  0x6e   :  { %v463_v11 = vld [vmem:[#allocation2 + $0x980] sm:$0xff]  ;;  %822 = vmatpush.msrb.mxu3 %v663_v10  ;;  %v412_v10 = vld [vmem:[#allocation2 + $0x7e8] sm:$0xff] }
  0x6f   :  { %v527_v12 = vld [vmem:[#allocation2 + $0xb80] sm:$0xff]  ;;  %764 = vmatpush.msrb.mxu0 %v463_v11  ;;  %v212_v11 = vld [vmem:[#allocation2 + $0x1a8] sm:$0xff] }
  0x70   :  { %v591_v13 = vld [vmem:[#allocation2 + $0xd80] sm:$0xff]  ;;  %784 = vmatpush.msrb.mxu1 %v527_v12  ;;  %v276_v12 = vld [vmem:[#allocation2 + $0x3a8] sm:$0xff] }
  0x71   :  { %v659_v14 = vld [vmem:[#allocation2 + $0xfa0] sm:$0xff]  ;;  %804 = vmatpush.msrb.mxu2 %v591_v13  ;;  %v340_v13 = vld [vmem:[#allocation2 + $0x5a8] sm:$0xff] }
  0x72   :  { %v459_v15 = vld [vmem:[#allocation2 + $0x960] sm:$0xff]  ;;  %823 = vmatpush.msrb.mxu3 %v659_v14  ;;  %v408_v14 = vld [vmem:[#allocation2 + $0x7c8] sm:$0xff] }
  0x73   :  { %v523_v16 = vld [vmem:[#allocation2 + $0xb60] sm:$0xff]  ;;  %765 = vmatpush.msrb.mxu0 %v459_v15  ;;  %v208_v15 = vld [vmem:[#allocation2 + $0x188] sm:$0xff] }
  0x74   :  { %v587_v17 = vld [vmem:[#allocation2 + $0xd60] sm:$0xff]  ;;  %785 = vmatpush.msrb.mxu1 %v523_v16  ;;  %v272_v16 = vld [vmem:[#allocation2 + $0x388] sm:$0xff] }
  0x75   :  { %v655_v18 = vld [vmem:[#allocation2 + $0xf80] sm:$0xff]  ;;  %805 = vmatpush.msrb.mxu2 %v587_v17  ;;  %v336_v17 = vld [vmem:[#allocation2 + $0x588] sm:$0xff] }
  0x76   :  { %v455_v19 = vld [vmem:[#allocation2 + $0x940] sm:$0xff]  ;;  %824 = vmatpush.msrb.mxu3 %v655_v18  ;;  %v404_v18 = vld [vmem:[#allocation2 + $0x7a8] sm:$0xff] }
  0x77   :  { %v519_v20 = vld [vmem:[#allocation2 + $0xb40] sm:$0xff]  ;;  %766 = vmatpush.msrb.mxu0 %v455_v19  ;;  %v1946_v19 = vld [vmem:[%s2100_s0 + $0x30] sm:$0xff] }
  0x78   :  { %v583_v21 = vld [vmem:[#allocation2 + $0xd40] sm:$0xff]  ;;  %786 = vmatpush.msrb.mxu1 %v519_v20  ;;  %v204_v20 = vld [vmem:[#allocation2 + $0x168] sm:$0xff] }
  0x79   :  { %v651_v22 = vld [vmem:[#allocation2 + $0xf60] sm:$0xff]  ;;  %806 = vmatpush.msrb.mxu2 %v583_v21  ;;  %v268_v21 = vld [vmem:[#allocation2 + $0x368] sm:$0xff] }
  0x7a   :  { %v451_v23 = vld [vmem:[#allocation2 + $0x920] sm:$0xff]  ;;  %825 = vmatpush.msrb.mxu3 %v651_v22  ;;  %v332_v22 = vld [vmem:[#allocation2 + $0x568] sm:$0xff] }
  0x7b   :  { %v515_v24 = vld [vmem:[#allocation2 + $0xb20] sm:$0xff]  ;;  %767 = vmatpush.msrb.mxu0 %v451_v23  ;;  %v400_v23 = vld [vmem:[#allocation2 + $0x788] sm:$0xff] }
  0x7c   :  { %v579_v25 = vld [vmem:[#allocation2 + $0xd20] sm:$0xff]  ;;  %787 = vmatpush.msrb.mxu1 %v515_v24 }
  0x7d   :  { %v647_v26 = vld [vmem:[#allocation2 + $0xf40] sm:$0xff]  ;;  %807 = vmatpush.msrb.mxu2 %v579_v25  ;;  %v1957_v25 = vld [vmem:[%s2100_s0 + $0x38] sm:$0xff] }
  0x7e   :  { %v447_v27 = vld [vmem:[#allocation2 + $0x900] sm:$0xff]  ;;  %826 = vmatpush.msrb.mxu3 %v647_v26  ;;  %v200_v26 = vld [vmem:[#allocation2 + $0x148] sm:$0xff] }
  0x7f   :  { %v511_v28 = vld [vmem:[#allocation2 + $0xb00] sm:$0xff]  ;;  %768 = vmatpush.msrb.mxu0 %v447_v27  ;;  %v264_v27 = vld [vmem:[#allocation2 + $0x348] sm:$0xff] }
  0x80   :  { %v575_v29 = vld [vmem:[#allocation2 + $0xd00] sm:$0xff]  ;;  %788 = vmatpush.msrb.mxu1 %v511_v28  ;;  %v328_v28 = vld [vmem:[#allocation2 + $0x548] sm:$0xff] }
  0x81   :  { %v643_v30 = vld [vmem:[#allocation2 + $0xf20] sm:$0xff]  ;;  %808 = vmatpush.msrb.mxu2 %v575_v29  ;;  %v396_v29 = vld [vmem:[#allocation2 + $0x768] sm:$0xff] }
  0x82   :  { %v443_v31 = vld [vmem:[#allocation2 + $0x8e0] sm:$0xff]  ;;  %827 = vmatpush.msrb.mxu3 %v643_v30  ;;  %v1963_v30 = vld [vmem:[%s2100_s0 + $0x28] sm:$0xff] }
  0x83   :  { %v507_v32 = vld [vmem:[#allocation2 + $0xae0] sm:$0xff]  ;;  %769 = vmatpush.msrb.mxu0 %v443_v31  ;;  %v196_v31 = vld [vmem:[#allocation2 + $0x128] sm:$0xff] }
  0x84   :  { %v571_v33 = vld [vmem:[#allocation2 + $0xce0] sm:$0xff]  ;;  %789 = vmatpush.msrb.mxu1 %v507_v32  ;;  %v260_v32 = vld [vmem:[#allocation2 + $0x328] sm:$0xff] }
  0x85   :  { %v639_v34 = vld [vmem:[#allocation2 + $0xf00] sm:$0xff]  ;;  %809 = vmatpush.msrb.mxu2 %v571_v33  ;;  %v324_v33 = vld [vmem:[#allocation2 + $0x528] sm:$0xff] }
  0x86   :  { %v439_v35 = vld [vmem:[#allocation2 + $0x8c0] sm:$0xff]  ;;  %828 = vmatpush.msrb.mxu3 %v639_v34  ;;  %v392_v34 = vld [vmem:[#allocation2 + $0x748] sm:$0xff] }
  0x87   :  { %v503_v36 = vld [vmem:[#allocation2 + $0xac0] sm:$0xff]  ;;  %770 = vmatpush.msrb.mxu0 %v439_v35  ;;  %v192_v35 = vld [vmem:[#allocation2 + $0x108] sm:$0xff] }
  0x88   :  { %v567_v37 = vld [vmem:[#allocation2 + $0xcc0] sm:$0xff]  ;;  %790 = vmatpush.msrb.mxu1 %v503_v36  ;;  %v256_v36 = vld [vmem:[#allocation2 + $0x308] sm:$0xff] }
  0x89   :  { %v635_v38 = vld [vmem:[#allocation2 + $0xee0] sm:$0xff]  ;;  %810 = vmatpush.msrb.mxu2 %v567_v37  ;;  %v320_v37 = vld [vmem:[#allocation2 + $0x508] sm:$0xff] }
  0x8a   :  { %v435_v39 = vld [vmem:[#allocation2 + $0x8a0] sm:$0xff]  ;;  %829 = vmatpush.msrb.mxu3 %v635_v38  ;;  %v388_v38 = vld [vmem:[#allocation2 + $0x728] sm:$0xff] }
  0x8b   :  { %v499_v40 = vld [vmem:[#allocation2 + $0xaa0] sm:$0xff]  ;;  %771 = vmatpush.msrb.mxu0 %v435_v39  ;;  %v188_v39 = vld [vmem:[#allocation2 + $0xe8] sm:$0xff] }
  0x8c   :  { %v563_v41 = vld [vmem:[#allocation2 + $0xca0] sm:$0xff]  ;;  %791 = vmatpush.msrb.mxu1 %v499_v40  ;;  %v252_v40 = vld [vmem:[#allocation2 + $0x2e8] sm:$0xff] }
  0x8d   :  { %v631_v42 = vld [vmem:[#allocation2 + $0xec0] sm:$0xff]  ;;  %811 = vmatpush.msrb.mxu2 %v563_v41  ;;  %v316_v41 = vld [vmem:[#allocation2 + $0x4e8] sm:$0xff] }
  0x8e   :  { %v431_v43 = vld [vmem:[#allocation2 + $0x880] sm:$0xff]  ;;  %830 = vmatpush.msrb.mxu3 %v631_v42  ;;  %v384_v42 = vld [vmem:[#allocation2 + $0x708] sm:$0xff] }
  0x8f   :  { %v495_v44 = vld [vmem:[#allocation2 + $0xa80] sm:$0xff]  ;;  %772 = vmatpush.msrb.mxu0 %v431_v43  ;;  %v184_v43 = vld [vmem:[#allocation2 + $0xc8] sm:$0xff] }
  0x90   :  { %v559_v45 = vld [vmem:[#allocation2 + $0xc80] sm:$0xff]  ;;  %792 = vmatpush.msrb.mxu1 %v495_v44  ;;  %v248_v44 = vld [vmem:[#allocation2 + $0x2c8] sm:$0xff] }
  0x91   :  { %v627_v46 = vld [vmem:[#allocation2 + $0xea0] sm:$0xff]  ;;  %812 = vmatpush.msrb.mxu2 %v559_v45  ;;  %v312_v45 = vld [vmem:[#allocation2 + $0x4c8] sm:$0xff] }
  0x92   :  { %v427_v47 = vld [vmem:[#allocation2 + $0x860] sm:$0xff]  ;;  %831 = vmatpush.msrb.mxu3 %v627_v46  ;;  %v380_v46 = vld [vmem:[#allocation2 + $0x6e8] sm:$0xff] }
  0x93   :  { %v491_v48 = vld [vmem:[#allocation2 + $0xa60] sm:$0xff]  ;;  %773 = vmatpush.msrb.mxu0 %v427_v47  ;;  %v180_v47 = vld [vmem:[#allocation2 + $0xa8] sm:$0xff] }
  0x94   :  { %v555_v49 = vld [vmem:[#allocation2 + $0xc60] sm:$0xff]  ;;  %793 = vmatpush.msrb.mxu1 %v491_v48  ;;  %v244_v48 = vld [vmem:[#allocation2 + $0x2a8] sm:$0xff] }
  0x95   :  { %v623_v50 = vld [vmem:[#allocation2 + $0xe80] sm:$0xff]  ;;  %813 = vmatpush.msrb.mxu2 %v555_v49  ;;  %v308_v49 = vld [vmem:[#allocation2 + $0x4a8] sm:$0xff] }
  0x96   :  { %v423_v51 = vld [vmem:[#allocation2 + $0x840] sm:$0xff]  ;;  %832 = vmatpush.msrb.mxu3 %v623_v50  ;;  %v376_v50 = vld [vmem:[#allocation2 + $0x6c8] sm:$0xff] }
  0x97   :  { %v487_v52 = vld [vmem:[#allocation2 + $0xa40] sm:$0xff]  ;;  %774 = vmatpush.msrb.mxu0 %v423_v51  ;;  %v176_v51 = vld [vmem:[#allocation2 + $0x88] sm:$0xff] }
  0x98   :  { %v551_v53 = vld [vmem:[#allocation2 + $0xc40] sm:$0xff]  ;;  %794 = vmatpush.msrb.mxu1 %v487_v52  ;;  %v240_v52 = vld [vmem:[#allocation2 + $0x288] sm:$0xff] }
  0x99   :  { %v619_v54 = vld [vmem:[#allocation2 + $0xe60] sm:$0xff]  ;;  %814 = vmatpush.msrb.mxu2 %v551_v53  ;;  %v304_v53 = vld [vmem:[#allocation2 + $0x488] sm:$0xff] }
  0x9a   :  { %v419_v55 = vld [vmem:[#allocation2 + $0x820] sm:$0xff]  ;;  %833 = vmatpush.msrb.mxu3 %v619_v54  ;;  %v372_v54 = vld [vmem:[#allocation2 + $0x6a8] sm:$0xff] }
  0x9b   :  { %v483_v56 = vld [vmem:[#allocation2 + $0xa20] sm:$0xff]  ;;  %775 = vmatpush.msrb.mxu0 %v419_v55  ;;  %v172_v55 = vld [vmem:[#allocation2 + $0x68] sm:$0xff] }
  0x9c   :  { %v547_v57 = vld [vmem:[#allocation2 + $0xc20] sm:$0xff]  ;;  %795 = vmatpush.msrb.mxu1 %v483_v56  ;;  %v236_v56 = vld [vmem:[#allocation2 + $0x268] sm:$0xff] }
  0x9d   :  { %v615_v58 = vld [vmem:[#allocation2 + $0xe40] sm:$0xff]  ;;  %815 = vmatpush.msrb.mxu2 %v547_v57  ;;  %v300_v57 = vld [vmem:[#allocation2 + $0x468] sm:$0xff] }
  0x9e   :  { %v415_v59 = vld [vmem:[#allocation2 + $0x800] sm:$0xff]  ;;  %834 = vmatpush.msrb.mxu3 %v615_v58  ;;  %v368_v58 = vld [vmem:[#allocation2 + $0x688] sm:$0xff] }
  0x9f   :  { %v479_v60 = vld [vmem:[#allocation2 + $0xa00] sm:$0xff]  ;;  %776 = vmatpush.msrb.mxu0 %v415_v59  ;;  %v168_v59 = vld [vmem:[#allocation2 + $0x48] sm:$0xff] }
  0xa0   :  { %v543_v61 = vld [vmem:[#allocation2 + $0xc00] sm:$0xff]  ;;  %796 = vmatpush.msrb.mxu1 %v479_v60  ;;  %v232_v60 = vld [vmem:[#allocation2 + $0x248] sm:$0xff] }
  0xa1   :  { %v611_v62 = vld [vmem:[#allocation2 + $0xe20] sm:$0xff]  ;;  %816 = vmatpush.msrb.mxu2 %v543_v61  ;;  %797 = vmatmul.f32.vlgmr.msrb.gmra.mxu1 %v1963_v30  ;;  %v296_v61 = vld [vmem:[#allocation2 + $0x448] sm:$0xff] }
  0xa2   :  { %v1922_v63 = vld [vmem:[%s2100_s0] sm:$0xff]  ;;  %835 = vmatpush.msrb.mxu3 %v611_v62  ;;  %861 = vmatpush.msra.mxu1 %v284_v3  ;;  %v364_v62 = vld [vmem:[#allocation2 + $0x668] sm:$0xff] }
  0xa3   :  { %697 = vmatmul.f32.vlgmr.msra.gmra.mxu0 %v1922_v63  ;;  %v607_v5 = vld [vmem:[#allocation2 + $0xe00] sm:$0xff]  ;;  %881 = vmatpush.msra.mxu2 %v348_v4  ;;  %v228_v3 = vld [vmem:[#allocation2 + $0x228] sm:$0xff] }
  0xa4   :  { %841 = vmatpush.msra.mxu0 %v220_v2  ;;  %836 = vmatpush.msrb.mxu3 %v607_v5  ;;  %v1951_v24 = vld [vmem:[%s2100_s0 + $0x20] sm:$0xff]  ;;  %v164_v2 = vld [vmem:[#allocation2 + $0x28] sm:$0xff] }
  0xa5   :  { %862 = vmatpush.msra.mxu1 %v280_v8  ;;  %882 = vmatpush.msra.mxu2 %v344_v9  ;;  %v292_v4 = vld [vmem:[#allocation2 + $0x428] sm:$0xff] }
  0xa6   :  { %842 = vmatpush.msra.mxu0 %v216_v6  ;;  %901 = vmatpush.msra.mxu3 %v412_v10  ;;  %v360_v5 = vld [vmem:[#allocation2 + $0x648] sm:$0xff] }
  0xa7   :  { %863 = vmatpush.msra.mxu1 %v276_v12  ;;  %883 = vmatpush.msra.mxu2 %v340_v13  ;;  %v160_v6 = vld [vmem:[#allocation2 + $0x8] sm:$0xff] }
  0xa8   :  { %843 = vmatpush.msra.mxu0 %v212_v11  ;;  %902 = vmatpush.msra.mxu3 %v408_v14  ;;  %v224_v8 = vld [vmem:[#allocation2 + $0x208] sm:$0xff] }
  0xa9   :  { %864 = vmatpush.msra.mxu1 %v272_v16  ;;  %884 = vmatpush.msra.mxu2 %v336_v17  ;;  %v288_v9 = vld [vmem:[#allocation2 + $0x408] sm:$0xff] }
  0xaa   :  { %844 = vmatpush.msra.mxu0 %v208_v15  ;;  %903 = vmatpush.msra.mxu3 %v404_v18  ;;  %v356_v10 = vld [vmem:[#allocation2 + $0x628] sm:$0xff] }
  0xab   :  { %817 = vmatmul.f32.vlgmr.msrb.gmra.mxu2 %v1946_v19  ;;  %865 = vmatpush.msra.mxu1 %v268_v21  ;;  %v476_v11 = vld [vmem:[#allocation2 + $0x9e8] sm:$0xff] }
  0xac   :  { %845 = vmatpush.msra.mxu0 %v204_v20  ;;  %885 = vmatpush.msra.mxu2 %v332_v22  ;;  %v540_v12 = vld [vmem:[#allocation2 + $0xbe8] sm:$0xff] }
  0xad   :  { %904 = vmatpush.msra.mxu3 %v400_v23  ;;  %777 = vmatmul.f32.vlgmr.msrb.gmra.mxu0 %v1951_v24  ;;  %v604_v13 = vld [vmem:[#allocation2 + $0xde8] sm:$0xff] }
  0xae   :  { %837 = vmatmul.f32.vlgmr.msrb.gmra.mxu3 %v1957_v25  ;;  %846 = vmatpush.msra.mxu0 %v200_v26  ;;  %v352_v14 = vld [vmem:[#allocation2 + $0x608] sm:$0xff] }
  0xaf   :  { %866 = vmatpush.msra.mxu1 %v264_v27  ;;  %886 = vmatpush.msra.mxu2 %v328_v28  ;;  %v472_v15 = vld [vmem:[#allocation2 + $0x9c8] sm:$0xff] }
  0xb0   :  { %905 = vmatpush.msra.mxu3 %v396_v29  ;;  %847 = vmatpush.msra.mxu0 %v196_v31  ;;  %v536_v16 = vld [vmem:[#allocation2 + $0xbc8] sm:$0xff] }
  0xb1   :  { %867 = vmatpush.msra.mxu1 %v260_v32  ;;  %887 = vmatpush.msra.mxu2 %v324_v33  ;;  %v600_v17 = vld [vmem:[#allocation2 + $0xdc8] sm:$0xff] }
  0xb2   :  { %906 = vmatpush.msra.mxu3 %v392_v34  ;;  %848 = vmatpush.msra.mxu0 %v192_v35  ;;  %v668_v18 = vld [vmem:[#allocation2 + $0xfe8] sm:$0xff] }
  0xb3   :  { %868 = vmatpush.msra.mxu1 %v256_v36  ;;  %888 = vmatpush.msra.mxu2 %v320_v37  ;;  %v468_v20 = vld [vmem:[#allocation2 + $0x9a8] sm:$0xff] }
  0xb4   :  { %907 = vmatpush.msra.mxu3 %v388_v38  ;;  %849 = vmatpush.msra.mxu0 %v188_v39  ;;  %v532_v21 = vld [vmem:[#allocation2 + $0xba8] sm:$0xff] }
  0xb5   :  { %869 = vmatpush.msra.mxu1 %v252_v40  ;;  %889 = vmatpush.msra.mxu2 %v316_v41  ;;  %v596_v22 = vld [vmem:[#allocation2 + $0xda8] sm:$0xff] }
  0xb6   :  { %908 = vmatpush.msra.mxu3 %v384_v42  ;;  %850 = vmatpush.msra.mxu0 %v184_v43  ;;  %v664_v23 = vld [vmem:[#allocation2 + $0xfc8] sm:$0xff] }
  0xb7   :  { %870 = vmatpush.msra.mxu1 %v248_v44  ;;  %890 = vmatpush.msra.mxu2 %v312_v45  ;;  %v464_v26 = vld [vmem:[#allocation2 + $0x988] sm:$0xff] }
  0xb8   :  { %909 = vmatpush.msra.mxu3 %v380_v46  ;;  %851 = vmatpush.msra.mxu0 %v180_v47  ;;  %v528_v27 = vld [vmem:[#allocation2 + $0xb88] sm:$0xff] }
  0xb9   :  { %871 = vmatpush.msra.mxu1 %v244_v48  ;;  %891 = vmatpush.msra.mxu2 %v308_v49  ;;  %v592_v28 = vld [vmem:[#allocation2 + $0xd88] sm:$0xff] }
  0xba   :  { %910 = vmatpush.msra.mxu3 %v376_v50  ;;  %852 = vmatpush.msra.mxu0 %v176_v51  ;;  %v660_v29 = vld [vmem:[#allocation2 + $0xfa8] sm:$0xff] }
  0xbb   :  { %872 = vmatpush.msra.mxu1 %v240_v52  ;;  %892 = vmatpush.msra.mxu2 %v304_v53  ;;  %v460_v31 = vld [vmem:[#allocation2 + $0x968] sm:$0xff] }
  0xbc   :  { %911 = vmatpush.msra.mxu3 %v372_v54  ;;  %853 = vmatpush.msra.mxu0 %v172_v55  ;;  %v524_v32 = vld [vmem:[#allocation2 + $0xb68] sm:$0xff] }
  0xbd   :  { %873 = vmatpush.msra.mxu1 %v236_v56  ;;  %893 = vmatpush.msra.mxu2 %v300_v57  ;;  %v588_v33 = vld [vmem:[#allocation2 + $0xd68] sm:$0xff] }
  0xbe   :  { %912 = vmatpush.msra.mxu3 %v368_v58  ;;  %854 = vmatpush.msra.mxu0 %v168_v59  ;;  %v656_v34 = vld [vmem:[#allocation2 + $0xf88] sm:$0xff] }
  0xbf   :  { %874 = vmatpush.msra.mxu1 %v232_v60  ;;  %894 = vmatpush.msra.mxu2 %v296_v61  ;;  %v456_v35 = vld [vmem:[#allocation2 + $0x948] sm:$0xff] }
  0xc0   :  { %913 = vmatpush.msra.mxu3 %v364_v62  ;;  %855 = vmatpush.msra.mxu0 %v164_v2  ;;  %v520_v36 = vld [vmem:[#allocation2 + $0xb48] sm:$0xff] }
  0xc1   :  { %875 = vmatpush.msra.mxu1 %v228_v3  ;;  %895 = vmatpush.msra.mxu2 %v292_v4  ;;  %v584_v37 = vld [vmem:[#allocation2 + $0xd48] sm:$0xff] }
  0xc2   :  { %914 = vmatpush.msra.mxu3 %v360_v5  ;;  %856 = vmatpush.msra.mxu0 %v160_v6  ;;  %v652_v38 = vld [vmem:[#allocation2 + $0xf68] sm:$0xff] }
  0xc3   :  { %876 = vmatpush.msra.mxu1 %v224_v8  ;;  %896 = vmatpush.msra.mxu2 %v288_v9  ;;  %v452_v39 = vld [vmem:[#allocation2 + $0x928] sm:$0xff] }
  0xc4   :  { %915 = vmatpush.msra.mxu3 %v356_v10  ;;  %921 = vmatpush.msrb.mxu0 %v476_v11  ;;  %v516_v40 = vld [vmem:[#allocation2 + $0xb28] sm:$0xff] }
  0xc5   :  { %941 = vmatpush.msrb.mxu1 %v540_v12  ;;  %961 = vmatpush.msrb.mxu2 %v604_v13  ;;  %v580_v41 = vld [vmem:[#allocation2 + $0xd28] sm:$0xff] }
  0xc6   :  { %916 = vmatpush.msra.mxu3 %v352_v14  ;;  %922 = vmatpush.msrb.mxu0 %v472_v15  ;;  %v648_v42 = vld [vmem:[#allocation2 + $0xf48] sm:$0xff] }
  0xc7   :  { %942 = vmatpush.msrb.mxu1 %v536_v16  ;;  %962 = vmatpush.msrb.mxu2 %v600_v17  ;;  %v448_v43 = vld [vmem:[#allocation2 + $0x908] sm:$0xff] }
  0xc8   :  { %981 = vmatpush.msrb.mxu3 %v668_v18  ;;  %923 = vmatpush.msrb.mxu0 %v468_v20  ;;  %v512_v44 = vld [vmem:[#allocation2 + $0xb08] sm:$0xff]  ;;  %v221_v20 = vld [vmem:[#allocation2 + $0x1f0] sm:$0xff] }
  0xc9   :  { %943 = vmatpush.msrb.mxu1 %v532_v21  ;;  %963 = vmatpush.msrb.mxu2 %v596_v22  ;;  %v576_v45 = vld [vmem:[#allocation2 + $0xd08] sm:$0xff]  ;;  %v285_v21 = vld [vmem:[#allocation2 + $0x3f0] sm:$0xff] }
  0xca   :  { %982 = vmatpush.msrb.mxu3 %v664_v23  ;;  %924 = vmatpush.msrb.mxu0 %v464_v26  ;;  %v644_v46 = vld [vmem:[#allocation2 + $0xf28] sm:$0xff]  ;;  %v349_v22 = vld [vmem:[#allocation2 + $0x5f0] sm:$0xff] }
  0xcb   :  { %944 = vmatpush.msrb.mxu1 %v528_v27  ;;  %964 = vmatpush.msrb.mxu2 %v592_v28  ;;  %v444_v47 = vld [vmem:[#allocation2 + $0x8e8] sm:$0xff]  ;;  %v217_v26 = vld [vmem:[#allocation2 + $0x1d0] sm:$0xff] }
  0xcc   :  { %983 = vmatpush.msrb.mxu3 %v660_v29  ;;  %925 = vmatpush.msrb.mxu0 %v460_v31  ;;  %v508_v48 = vld [vmem:[#allocation2 + $0xae8] sm:$0xff]  ;;  %v281_v27 = vld [vmem:[#allocation2 + $0x3d0] sm:$0xff] }
  0xcd   :  { %945 = vmatpush.msrb.mxu1 %v524_v32  ;;  %965 = vmatpush.msrb.mxu2 %v588_v33  ;;  %v572_v49 = vld [vmem:[#allocation2 + $0xce8] sm:$0xff]  ;;  %v345_v28 = vld [vmem:[#allocation2 + $0x5d0] sm:$0xff] }
  0xce   :  { %984 = vmatpush.msrb.mxu3 %v656_v34  ;;  %926 = vmatpush.msrb.mxu0 %v456_v35  ;;  %v640_v50 = vld [vmem:[#allocation2 + $0xf08] sm:$0xff]  ;;  %v413_v29 = vld [vmem:[#allocation2 + $0x7f0] sm:$0xff] }
  0xcf   :  { %946 = vmatpush.msrb.mxu1 %v520_v36  ;;  %966 = vmatpush.msrb.mxu2 %v584_v37  ;;  %v440_v51 = vld [vmem:[#allocation2 + $0x8c8] sm:$0xff]  ;;  %v213_v31 = vld [vmem:[#allocation2 + $0x1b0] sm:$0xff] }
  0xd0   :  { %985 = vmatpush.msrb.mxu3 %v652_v38  ;;  %927 = vmatpush.msrb.mxu0 %v452_v39  ;;  %v504_v52 = vld [vmem:[#allocation2 + $0xac8] sm:$0xff]  ;;  %v277_v32 = vld [vmem:[#allocation2 + $0x3b0] sm:$0xff] }
  0xd1   :  { %947 = vmatpush.msrb.mxu1 %v516_v40  ;;  %967 = vmatpush.msrb.mxu2 %v580_v41  ;;  %v568_v53 = vld [vmem:[#allocation2 + $0xcc8] sm:$0xff]  ;;  %v409_v33 = vld [vmem:[#allocation2 + $0x7d0] sm:$0xff] }
  0xd2   :  { %986 = vmatpush.msrb.mxu3 %v648_v42  ;;  %928 = vmatpush.msrb.mxu0 %v448_v43  ;;  %v636_v54 = vld [vmem:[#allocation2 + $0xee8] sm:$0xff]  ;;  %v273_v34 = vld [vmem:[#allocation2 + $0x390] sm:$0xff] }
  0xd3   :  { %948 = vmatpush.msrb.mxu1 %v512_v44  ;;  %968 = vmatpush.msrb.mxu2 %v576_v45  ;;  %v436_v55 = vld [vmem:[#allocation2 + $0x8a8] sm:$0xff]  ;;  %v337_v35 = vld [vmem:[#allocation2 + $0x590] sm:$0xff] }
  0xd4   :  { %987 = vmatpush.msrb.mxu3 %v644_v46  ;;  %929 = vmatpush.msrb.mxu0 %v444_v47  ;;  %v500_v56 = vld [vmem:[#allocation2 + $0xaa8] sm:$0xff]  ;;  %v405_v36 = vld [vmem:[#allocation2 + $0x7b0] sm:$0xff] }
  0xd5   :  { %949 = vmatpush.msrb.mxu1 %v508_v48  ;;  %969 = vmatpush.msrb.mxu2 %v572_v49  ;;  %v564_v57 = vld [vmem:[#allocation2 + $0xca8] sm:$0xff]  ;;  %v205_v37 = vld [vmem:[#allocation2 + $0x170] sm:$0xff] }
  0xd6   :  { %988 = vmatpush.msrb.mxu3 %v640_v50  ;;  %930 = vmatpush.msrb.mxu0 %v440_v51  ;;  %v632_v58 = vld [vmem:[#allocation2 + $0xec8] sm:$0xff]  ;;  %v269_v38 = vld [vmem:[#allocation2 + $0x370] sm:$0xff] }
  0xd7   :  { %950 = vmatpush.msrb.mxu1 %v504_v52  ;;  %970 = vmatpush.msrb.mxu2 %v568_v53  ;;  %v432_v59 = vld [vmem:[#allocation2 + $0x888] sm:$0xff]  ;;  %v333_v39 = vld [vmem:[#allocation2 + $0x570] sm:$0xff] }
  0xd8   :  { %989 = vmatpush.msrb.mxu3 %v636_v54  ;;  %v496_v60 = vld [vmem:[#allocation2 + $0xa88] sm:$0xff]  ;;  %931 = vmatpush.msrb.mxu0 %v436_v55  ;;  %v401_v40 = vld [vmem:[#allocation2 + $0x790] sm:$0xff] }
  0xd9   :  { %951 = vmatpush.msrb.mxu1 %v500_v56  ;;  %v560_v61 = vld [vmem:[#allocation2 + $0xc88] sm:$0xff]  ;;  %971 = vmatpush.msrb.mxu2 %v564_v57  ;;  %v201_v41 = vld [vmem:[#allocation2 + $0x150] sm:$0xff] }
  0xda   :  { %v628_v62 = vld [vmem:[#allocation2 + $0xea8] sm:$0xff]  ;;  %990 = vmatpush.msrb.mxu3 %v632_v58  ;;  %932 = vmatpush.msrb.mxu0 %v432_v59  ;;  %v265_v42 = vld [vmem:[#allocation2 + $0x350] sm:$0xff] }
  0xdb   :  { %v428_v2 = vld [vmem:[#allocation2 + $0x868] sm:$0xff]  ;;  %952 = vmatpush.msrb.mxu1 %v496_v60  ;;  %972 = vmatpush.msrb.mxu2 %v560_v61  ;;  %v329_v43 = vld [vmem:[#allocation2 + $0x550] sm:$0xff] }
  0xdc   :  { %v492_v3 = vld [vmem:[#allocation2 + $0xa68] sm:$0xff]  ;;  %991 = vmatpush.msrb.mxu3 %v628_v62  ;;  %933 = vmatpush.msrb.mxu0 %v428_v2  ;;  %v397_v44 = vld [vmem:[#allocation2 + $0x770] sm:$0xff] }
  0xdd   :  { %v556_v4 = vld [vmem:[#allocation2 + $0xc68] sm:$0xff]  ;;  %953 = vmatpush.msrb.mxu1 %v492_v3  ;;  %857 = vmatmul.f32.vlgmr.msra.gmra.mxu0 %v1922_v63  ;;  %v341_v63 = vld [vmem:[#allocation2 + $0x5b0] sm:$0xff] }
  0xde   :  { %v624_v5 = vld [vmem:[#allocation2 + $0xe88] sm:$0xff]  ;;  %973 = vmatpush.msrb.mxu2 %v556_v4  ;;  %877 = vmatmul.f32.vlgmr.msra.gmra.mxu1 %v1927_v0  ;;  %v209_v0 = vld [vmem:[#allocation2 + $0x190] sm:$0xff] }
  0xdf   :  { %v424_v6 = vld [vmem:[#allocation2 + $0x848] sm:$0xff]  ;;  %992 = vmatpush.msrb.mxu3 %v624_v5  ;;  %897 = vmatmul.f32.vlgmr.msra.gmra.mxu2 %v1932_v1  ;;  %v197_v45 = vld [vmem:[#allocation2 + $0x130] sm:$0xff] }
  0xe0   :  { %v488_v8 = vld [vmem:[#allocation2 + $0xa48] sm:$0xff]  ;;  %934 = vmatpush.msrb.mxu0 %v424_v6  ;;  %917 = vmatmul.f32.vlgmr.msra.gmra.mxu3 %v1940_v7  ;;  %v261_v46 = vld [vmem:[#allocation2 + $0x330] sm:$0xff] }
  0xe1   :  { %v552_v9 = vld [vmem:[#allocation2 + $0xc48] sm:$0xff]  ;;  %954 = vmatpush.msrb.mxu1 %v488_v8  ;;  %v325_v47 = vld [vmem:[#allocation2 + $0x530] sm:$0xff] }
  0xe2   :  { %v620_v10 = vld [vmem:[#allocation2 + $0xe68] sm:$0xff]  ;;  %974 = vmatpush.msrb.mxu2 %v552_v9  ;;  %v393_v48 = vld [vmem:[#allocation2 + $0x750] sm:$0xff] }
  0xe3   :  { %v420_v11 = vld [vmem:[#allocation2 + $0x828] sm:$0xff]  ;;  %993 = vmatpush.msrb.mxu3 %v620_v10  ;;  %v193_v49 = vld [vmem:[#allocation2 + $0x110] sm:$0xff] }
  0xe4   :  { %v484_v12 = vld [vmem:[#allocation2 + $0xa28] sm:$0xff]  ;;  %935 = vmatpush.msrb.mxu0 %v420_v11  ;;  %v257_v50 = vld [vmem:[#allocation2 + $0x310] sm:$0xff] }
  0xe5   :  { %v548_v13 = vld [vmem:[#allocation2 + $0xc28] sm:$0xff]  ;;  %955 = vmatpush.msrb.mxu1 %v484_v12  ;;  %v321_v51 = vld [vmem:[#allocation2 + $0x510] sm:$0xff] }
  0xe6   :  { %v616_v14 = vld [vmem:[#allocation2 + $0xe48] sm:$0xff]  ;;  %975 = vmatpush.msrb.mxu2 %v548_v13  ;;  %v389_v52 = vld [vmem:[#allocation2 + $0x730] sm:$0xff] }
  0xe7   :  { %v416_v15 = vld [vmem:[#allocation2 + $0x808] sm:$0xff]  ;;  %994 = vmatpush.msrb.mxu3 %v616_v14  ;;  %v189_v53 = vld [vmem:[#allocation2 + $0xf0] sm:$0xff] }
  0xe8   :  { %v480_v16 = vld [vmem:[#allocation2 + $0xa08] sm:$0xff]  ;;  %936 = vmatpush.msrb.mxu0 %v416_v15  ;;  %v253_v54 = vld [vmem:[#allocation2 + $0x2f0] sm:$0xff] }
  0xe9   :  { %v544_v17 = vld [vmem:[#allocation2 + $0xc08] sm:$0xff]  ;;  %956 = vmatpush.msrb.mxu1 %v480_v16  ;;  %937 = vmatmul.f32.vlgmr.msrb.gmra.mxu0 %v1951_v24  ;;  %v317_v55 = vld [vmem:[#allocation2 + $0x4f0] sm:$0xff] }
  0xea   :  { %v612_v18 = vld [vmem:[#allocation2 + $0xe28] sm:$0xff]  ;;  %976 = vmatpush.msrb.mxu2 %v544_v17  ;;  %1001 = vmatpush.msra.mxu0 %v221_v20  ;;  %v385_v56 = vld [vmem:[#allocation2 + $0x710] sm:$0xff] }
  0xeb   :  { %995 = vmatpush.msrb.mxu3 %v612_v18  ;;  %v608_v23 = vld [vmem:[#allocation2 + $0xe08] sm:$0xff]  ;;  %1021 = vmatpush.msra.mxu1 %v285_v21  ;;  %v185_v57 = vld [vmem:[#allocation2 + $0xd0] sm:$0xff] }
  0xec   :  { %1041 = vmatpush.msra.mxu2 %v349_v22  ;;  %1002 = vmatpush.msra.mxu0 %v217_v26  ;;  %v249_v58 = vld [vmem:[#allocation2 + $0x2d0] sm:$0xff] }
  0xed   :  { %996 = vmatpush.msrb.mxu3 %v608_v23  ;;  %1022 = vmatpush.msra.mxu1 %v281_v27  ;;  %v313_v59 = vld [vmem:[#allocation2 + $0x4d0] sm:$0xff] }
  0xee   :  { %1042 = vmatpush.msra.mxu2 %v345_v28  ;;  %1003 = vmatpush.msra.mxu0 %v213_v31  ;;  %v381_v60 = vld [vmem:[#allocation2 + $0x6f0] sm:$0xff] }
  0xef   :  { %1061 = vmatpush.msra.mxu3 %v413_v29  ;;  %1023 = vmatpush.msra.mxu1 %v277_v32  ;;  %v181_v61 = vld [vmem:[#allocation2 + $0xb0] sm:$0xff] }
  0xf0   :  { %1043 = vmatpush.msra.mxu2 %v341_v63  ;;  %1004 = vmatpush.msra.mxu0 %v209_v0  ;;  %v245_v62 = vld [vmem:[#allocation2 + $0x2b0] sm:$0xff] }
  0xf1   :  { %1062 = vmatpush.msra.mxu3 %v409_v33  ;;  %1024 = vmatpush.msra.mxu1 %v273_v34  ;;  %v309_v2 = vld [vmem:[#allocation2 + $0x4b0] sm:$0xff] }
  0xf2   :  { %1044 = vmatpush.msra.mxu2 %v337_v35  ;;  %1005 = vmatpush.msra.mxu0 %v205_v37  ;;  %v377_v3 = vld [vmem:[#allocation2 + $0x6d0] sm:$0xff] }
  0xf3   :  { %1063 = vmatpush.msra.mxu3 %v405_v36  ;;  %977 = vmatmul.f32.vlgmr.msrb.gmra.mxu2 %v1946_v19  ;;  %v177_v4 = vld [vmem:[#allocation2 + $0x90] sm:$0xff] }
  0xf4   :  { %1025 = vmatpush.msra.mxu1 %v269_v38  ;;  %1045 = vmatpush.msra.mxu2 %v333_v39  ;;  %v241_v5 = vld [vmem:[#allocation2 + $0x290] sm:$0xff] }
  0xf5   :  { %1064 = vmatpush.msra.mxu3 %v401_v40  ;;  %1006 = vmatpush.msra.mxu0 %v201_v41  ;;  %v305_v6 = vld [vmem:[#allocation2 + $0x490] sm:$0xff] }
  0xf6   :  { %997 = vmatmul.f32.vlgmr.msrb.gmra.mxu3 %v1957_v25  ;;  %1026 = vmatpush.msra.mxu1 %v265_v42  ;;  %v373_v8 = vld [vmem:[#allocation2 + $0x6b0] sm:$0xff] }
  0xf7   :  { %1046 = vmatpush.msra.mxu2 %v329_v43  ;;  %1065 = vmatpush.msra.mxu3 %v397_v44  ;;  %v173_v9 = vld [vmem:[#allocation2 + $0x70] sm:$0xff] }
  0xf8   :  { %957 = vmatmul.f32.vlgmr.msrb.gmra.mxu1 %v1963_v30  ;;  %1007 = vmatpush.msra.mxu0 %v197_v45  ;;  %v237_v10 = vld [vmem:[#allocation2 + $0x270] sm:$0xff] }
  0xf9   :  { %1027 = vmatpush.msra.mxu1 %v261_v46  ;;  %1047 = vmatpush.msra.mxu2 %v325_v47  ;;  %v301_v11 = vld [vmem:[#allocation2 + $0x470] sm:$0xff] }
  0xfa   :  { %1066 = vmatpush.msra.mxu3 %v393_v48  ;;  %1008 = vmatpush.msra.mxu0 %v193_v49  ;;  %v369_v12 = vld [vmem:[#allocation2 + $0x690] sm:$0xff] }
  0xfb   :  { %1028 = vmatpush.msra.mxu1 %v257_v50  ;;  %1048 = vmatpush.msra.mxu2 %v321_v51  ;;  %v169_v13 = vld [vmem:[#allocation2 + $0x50] sm:$0xff] }
  0xfc   :  { %1067 = vmatpush.msra.mxu3 %v389_v52  ;;  %1009 = vmatpush.msra.mxu0 %v189_v53  ;;  %v233_v14 = vld [vmem:[#allocation2 + $0x250] sm:$0xff] }
  0xfd   :  { %1029 = vmatpush.msra.mxu1 %v253_v54  ;;  %1049 = vmatpush.msra.mxu2 %v317_v55  ;;  %v297_v15 = vld [vmem:[#allocation2 + $0x450] sm:$0xff] }
  0xfe   :  { %1068 = vmatpush.msra.mxu3 %v385_v56  ;;  %1010 = vmatpush.msra.mxu0 %v185_v57  ;;  %v365_v16 = vld [vmem:[#allocation2 + $0x670] sm:$0xff] }
  0xff   :  { %1030 = vmatpush.msra.mxu1 %v249_v58  ;;  %1050 = vmatpush.msra.mxu2 %v313_v59  ;;  %v165_v17 = vld [vmem:[#allocation2 + $0x30] sm:$0xff] }
 0x100   :  { %1069 = vmatpush.msra.mxu3 %v381_v60  ;;  %1011 = vmatpush.msra.mxu0 %v181_v61  ;;  %v229_v18 = vld [vmem:[#allocation2 + $0x230] sm:$0xff] }
 0x101   :  { %1031 = vmatpush.msra.mxu1 %v245_v62  ;;  %1051 = vmatpush.msra.mxu2 %v309_v2  ;;  %v293_v20 = vld [vmem:[#allocation2 + $0x430] sm:$0xff] }
 0x102   :  { %1070 = vmatpush.msra.mxu3 %v377_v3  ;;  %1012 = vmatpush.msra.mxu0 %v177_v4  ;;  %v361_v21 = vld [vmem:[#allocation2 + $0x650] sm:$0xff] }
 0x103   :  { %1032 = vmatpush.msra.mxu1 %v241_v5  ;;  %1052 = vmatpush.msra.mxu2 %v305_v6  ;;  %v161_v22 = vld [vmem:[#allocation2 + $0x10] sm:$0xff] }
 0x104   :  { %1071 = vmatpush.msra.mxu3 %v373_v8  ;;  %1013 = vmatpush.msra.mxu0 %v173_v9  ;;  %v225_v23 = vld [vmem:[#allocation2 + $0x210] sm:$0xff] }
 0x105   :  { %1033 = vmatpush.msra.mxu1 %v237_v10  ;;  %1053 = vmatpush.msra.mxu2 %v301_v11  ;;  %v289_v26 = vld [vmem:[#allocation2 + $0x410] sm:$0xff] }
 0x106   :  { %1072 = vmatpush.msra.mxu3 %v369_v12  ;;  %1014 = vmatpush.msra.mxu0 %v169_v13  ;;  %v357_v27 = vld [vmem:[#allocation2 + $0x630] sm:$0xff] }
 0x107   :  { %1034 = vmatpush.msra.mxu1 %v233_v14  ;;  %1054 = vmatpush.msra.mxu2 %v297_v15  ;;  %v477_v28 = vld [vmem:[#allocation2 + $0x9f0] sm:$0xff] }
 0x108   :  { %1073 = vmatpush.msra.mxu3 %v365_v16  ;;  %1015 = vmatpush.msra.mxu0 %v165_v17  ;;  %v541_v29 = vld [vmem:[#allocation2 + $0xbf0] sm:$0xff] }
 0x109   :  { %1035 = vmatpush.msra.mxu1 %v229_v18  ;;  %1055 = vmatpush.msra.mxu2 %v293_v20  ;;  %v605_v31 = vld [vmem:[#allocation2 + $0xdf0] sm:$0xff] }
 0x10a   :  { %1074 = vmatpush.msra.mxu3 %v361_v21  ;;  %1016 = vmatpush.msra.mxu0 %v161_v22  ;;  %v353_v32 = vld [vmem:[#allocation2 + $0x610] sm:$0xff] }
 0x10b   :  { %1036 = vmatpush.msra.mxu1 %v225_v23  ;;  %1056 = vmatpush.msra.mxu2 %v289_v26  ;;  %v473_v63 = vld [vmem:[#allocation2 + $0x9d0] sm:$0xff]  ;;  %v1979_v23 = vld [vmem:[%s2100_s0] sm:$0xff] }
 0x10c   :  { %1075 = vmatpush.msra.mxu3 %v357_v27  ;;  %v537_v33 = vld [vmem:[#allocation2 + $0xbd0] sm:$0xff]  ;;  %1081 = vmatpush.msrb.mxu0 %v477_v28 }
 0x10d   :  { %1101 = vmatpush.msrb.mxu1 %v541_v29  ;;  %v601_v0 = vld [vmem:[#allocation2 + $0xdd0] sm:$0xff]  ;;  %1121 = vmatpush.msrb.mxu2 %v605_v31  ;;  %v1986_v31 = vld [vmem:[%s2100_s0 + $0x8] sm:$0xff] }
 0x10e   :  { %v669_v34 = vld [vmem:[#allocation2 + $0xff0] sm:$0xff]  ;;  %1076 = vmatpush.msra.mxu3 %v353_v32  ;;  %1082 = vmatpush.msrb.mxu0 %v473_v63 }
 0x10f   :  { %v469_v35 = vld [vmem:[#allocation2 + $0x9b0] sm:$0xff]  ;;  %1102 = vmatpush.msrb.mxu1 %v537_v33  ;;  %1122 = vmatpush.msrb.mxu2 %v601_v0  ;;  %v222_v0 = vld [vmem:[#allocation2 + $0x1f8] sm:$0xff] }
 0x110   :  { %v533_v36 = vld [vmem:[#allocation2 + $0xbb0] sm:$0xff]  ;;  %1141 = vmatpush.msrb.mxu3 %v669_v34  ;;  %1083 = vmatpush.msrb.mxu0 %v469_v35  ;;  %v286_v34 = vld [vmem:[#allocation2 + $0x3f8] sm:$0xff] }
 0x111   :  { %v597_v37 = vld [vmem:[#allocation2 + $0xdb0] sm:$0xff]  ;;  %1103 = vmatpush.msrb.mxu1 %v533_v36  ;;  %1057 = vmatmul.f32.vlgmr.msra.gmra.mxu2 %v1932_v1  ;;  %v350_v35 = vld [vmem:[#allocation2 + $0x5f8] sm:$0xff] }
 0x112   :  { %v665_v38 = vld [vmem:[#allocation2 + $0xfd0] sm:$0xff]  ;;  %1123 = vmatpush.msrb.mxu2 %v597_v37  ;;  %1017 = vmatmul.f32.vlgmr.msra.gmra.mxu0 %v1979_v23  ;;  %v218_v37 = vld [vmem:[#allocation2 + $0x1d8] sm:$0xff] }
 0x113   :  { %v465_v39 = vld [vmem:[#allocation2 + $0x990] sm:$0xff]  ;;  %1142 = vmatpush.msrb.mxu3 %v665_v38  ;;  %1037 = vmatmul.f32.vlgmr.msra.gmra.mxu1 %v1986_v31  ;;  %v282_v38 = vld [vmem:[#allocation2 + $0x3d8] sm:$0xff] }
 0x114   :  { %v529_v40 = vld [vmem:[#allocation2 + $0xb90] sm:$0xff]  ;;  %1084 = vmatpush.msrb.mxu0 %v465_v39  ;;  %1077 = vmatmul.f32.vlgmr.msra.gmra.mxu3 %v1940_v7  ;;  %v346_v39 = vld [vmem:[#allocation2 + $0x5d8] sm:$0xff] }
 0x115   :  { %v593_v41 = vld [vmem:[#allocation2 + $0xd90] sm:$0xff]  ;;  %1104 = vmatpush.msrb.mxu1 %v529_v40  ;;  %v414_v40 = vld [vmem:[#allocation2 + $0x7f8] sm:$0xff] }
 0x116   :  { %v661_v42 = vld [vmem:[#allocation2 + $0xfb0] sm:$0xff]  ;;  %1124 = vmatpush.msrb.mxu2 %v593_v41  ;;  %v214_v41 = vld [vmem:[#allocation2 + $0x1b8] sm:$0xff] }
 0x117   :  { %v461_v43 = vld [vmem:[#allocation2 + $0x970] sm:$0xff]  ;;  %1143 = vmatpush.msrb.mxu3 %v661_v42  ;;  %v278_v42 = vld [vmem:[#allocation2 + $0x3b8] sm:$0xff] }
 0x118   :  { %v525_v44 = vld [vmem:[#allocation2 + $0xb70] sm:$0xff]  ;;  %1085 = vmatpush.msrb.mxu0 %v461_v43  ;;  %v342_v43 = vld [vmem:[#allocation2 + $0x5b8] sm:$0xff] }
 0x119   :  { %v589_v45 = vld [vmem:[#allocation2 + $0xd70] sm:$0xff]  ;;  %1105 = vmatpush.msrb.mxu1 %v525_v44  ;;  %v410_v44 = vld [vmem:[#allocation2 + $0x7d8] sm:$0xff] }
 0x11a   :  { %v657_v46 = vld [vmem:[#allocation2 + $0xf90] sm:$0xff]  ;;  %1125 = vmatpush.msrb.mxu2 %v589_v45  ;;  %v274_v45 = vld [vmem:[#allocation2 + $0x398] sm:$0xff] }
 0x11b   :  { %v457_v47 = vld [vmem:[#allocation2 + $0x950] sm:$0xff]  ;;  %1144 = vmatpush.msrb.mxu3 %v657_v46  ;;  %v338_v46 = vld [vmem:[#allocation2 + $0x598] sm:$0xff] }
 0x11c   :  { %v521_v48 = vld [vmem:[#allocation2 + $0xb50] sm:$0xff]  ;;  %1086 = vmatpush.msrb.mxu0 %v457_v47  ;;  %v406_v47 = vld [vmem:[#allocation2 + $0x7b8] sm:$0xff] }
 0x11d   :  { %v585_v49 = vld [vmem:[#allocation2 + $0xd50] sm:$0xff]  ;;  %1106 = vmatpush.msrb.mxu1 %v521_v48  ;;  %v334_v48 = vld [vmem:[#allocation2 + $0x578] sm:$0xff] }
 0x11e   :  { %v653_v50 = vld [vmem:[#allocation2 + $0xf70] sm:$0xff]  ;;  %1126 = vmatpush.msrb.mxu2 %v585_v49  ;;  %v402_v49 = vld [vmem:[#allocation2 + $0x798] sm:$0xff] }
 0x11f   :  { %v453_v51 = vld [vmem:[#allocation2 + $0x930] sm:$0xff]  ;;  %1145 = vmatpush.msrb.mxu3 %v653_v50  ;;  %v202_v50 = vld [vmem:[#allocation2 + $0x158] sm:$0xff] }
 0x120   :  { %v517_v52 = vld [vmem:[#allocation2 + $0xb30] sm:$0xff]  ;;  %1087 = vmatpush.msrb.mxu0 %v453_v51  ;;  %v266_v51 = vld [vmem:[#allocation2 + $0x358] sm:$0xff] }
 0x121   :  { %v581_v53 = vld [vmem:[#allocation2 + $0xd30] sm:$0xff]  ;;  %1107 = vmatpush.msrb.mxu1 %v517_v52  ;;  %v398_v52 = vld [vmem:[#allocation2 + $0x778] sm:$0xff] }
 0x122   :  { %v649_v54 = vld [vmem:[#allocation2 + $0xf50] sm:$0xff]  ;;  %1127 = vmatpush.msrb.mxu2 %v581_v53  ;;  %v198_v53 = vld [vmem:[#allocation2 + $0x138] sm:$0xff] }
 0x123   :  { %v449_v55 = vld [vmem:[#allocation2 + $0x910] sm:$0xff]  ;;  %1146 = vmatpush.msrb.mxu3 %v649_v54  ;;  %v262_v54 = vld [vmem:[#allocation2 + $0x338] sm:$0xff] }
 0x124   :  { %v513_v56 = vld [vmem:[#allocation2 + $0xb10] sm:$0xff]  ;;  %1088 = vmatpush.msrb.mxu0 %v449_v55  ;;  %v326_v55 = vld [vmem:[#allocation2 + $0x538] sm:$0xff] }
 0x125   :  { %v577_v57 = vld [vmem:[#allocation2 + $0xd10] sm:$0xff]  ;;  %1108 = vmatpush.msrb.mxu1 %v513_v56  ;;  %v394_v56 = vld [vmem:[#allocation2 + $0x758] sm:$0xff] }
 0x126   :  { %v645_v58 = vld [vmem:[#allocation2 + $0xf30] sm:$0xff]  ;;  %1128 = vmatpush.msrb.mxu2 %v577_v57  ;;  %v194_v57 = vld [vmem:[#allocation2 + $0x118] sm:$0xff] }
 0x127   :  { %v445_v59 = vld [vmem:[#allocation2 + $0x8f0] sm:$0xff]  ;;  %1147 = vmatpush.msrb.mxu3 %v645_v58  ;;  %v258_v58 = vld [vmem:[#allocation2 + $0x318] sm:$0xff] }
 0x128   :  { %v509_v60 = vld [vmem:[#allocation2 + $0xaf0] sm:$0xff]  ;;  %1089 = vmatpush.msrb.mxu0 %v445_v59  ;;  %v322_v59 = vld [vmem:[#allocation2 + $0x518] sm:$0xff] }
 0x129   :  { %v573_v61 = vld [vmem:[#allocation2 + $0xcf0] sm:$0xff]  ;;  %1109 = vmatpush.msrb.mxu1 %v509_v60  ;;  %v390_v60 = vld [vmem:[#allocation2 + $0x738] sm:$0xff] }
 0x12a   :  { %v641_v62 = vld [vmem:[#allocation2 + $0xf10] sm:$0xff]  ;;  %1129 = vmatpush.msrb.mxu2 %v573_v61  ;;  %v190_v61 = vld [vmem:[#allocation2 + $0xf8] sm:$0xff] }
 0x12b   :  { %v441_v2 = vld [vmem:[#allocation2 + $0x8d0] sm:$0xff]  ;;  %1148 = vmatpush.msrb.mxu3 %v641_v62  ;;  %v254_v62 = vld [vmem:[#allocation2 + $0x2f8] sm:$0xff] }
 0x12c   :  { %v505_v3 = vld [vmem:[#allocation2 + $0xad0] sm:$0xff]  ;;  %1090 = vmatpush.msrb.mxu0 %v441_v2  ;;  %v318_v2 = vld [vmem:[#allocation2 + $0x4f8] sm:$0xff] }
 0x12d   :  { %v569_v4 = vld [vmem:[#allocation2 + $0xcd0] sm:$0xff]  ;;  %1110 = vmatpush.msrb.mxu1 %v505_v3  ;;  %v386_v3 = vld [vmem:[#allocation2 + $0x718] sm:$0xff] }
 0x12e   :  { %v637_v5 = vld [vmem:[#allocation2 + $0xef0] sm:$0xff]  ;;  %1130 = vmatpush.msrb.mxu2 %v569_v4  ;;  %v186_v4 = vld [vmem:[#allocation2 + $0xd8] sm:$0xff] }
 0x12f   :  { %v437_v6 = vld [vmem:[#allocation2 + $0x8b0] sm:$0xff]  ;;  %1149 = vmatpush.msrb.mxu3 %v637_v5  ;;  %v250_v5 = vld [vmem:[#allocation2 + $0x2d8] sm:$0xff] }
 0x130   :  { %v501_v8 = vld [vmem:[#allocation2 + $0xab0] sm:$0xff]  ;;  %1091 = vmatpush.msrb.mxu0 %v437_v6  ;;  %v314_v6 = vld [vmem:[#allocation2 + $0x4d8] sm:$0xff] }
 0x131   :  { %v565_v9 = vld [vmem:[#allocation2 + $0xcb0] sm:$0xff]  ;;  %1111 = vmatpush.msrb.mxu1 %v501_v8  ;;  %v382_v8 = vld [vmem:[#allocation2 + $0x6f8] sm:$0xff] }
 0x132   :  { %v633_v10 = vld [vmem:[#allocation2 + $0xed0] sm:$0xff]  ;;  %1131 = vmatpush.msrb.mxu2 %v565_v9  ;;  %v182_v9 = vld [vmem:[#allocation2 + $0xb8] sm:$0xff] }
 0x133   :  { %v433_v11 = vld [vmem:[#allocation2 + $0x890] sm:$0xff]  ;;  %1150 = vmatpush.msrb.mxu3 %v633_v10  ;;  %v246_v10 = vld [vmem:[#allocation2 + $0x2b8] sm:$0xff] }
 0x134   :  { %v497_v12 = vld [vmem:[#allocation2 + $0xa90] sm:$0xff]  ;;  %1092 = vmatpush.msrb.mxu0 %v433_v11  ;;  %v310_v11 = vld [vmem:[#allocation2 + $0x4b8] sm:$0xff] }
 0x135   :  { %v561_v13 = vld [vmem:[#allocation2 + $0xc90] sm:$0xff]  ;;  %1112 = vmatpush.msrb.mxu1 %v497_v12  ;;  %v378_v12 = vld [vmem:[#allocation2 + $0x6d8] sm:$0xff] }
 0x136   :  { %v629_v14 = vld [vmem:[#allocation2 + $0xeb0] sm:$0xff]  ;;  %1132 = vmatpush.msrb.mxu2 %v561_v13  ;;  %v178_v13 = vld [vmem:[#allocation2 + $0x98] sm:$0xff] }
 0x137   :  { %v429_v15 = vld [vmem:[#allocation2 + $0x870] sm:$0xff]  ;;  %1151 = vmatpush.msrb.mxu3 %v629_v14  ;;  %v242_v14 = vld [vmem:[#allocation2 + $0x298] sm:$0xff] }
 0x138   :  { %v493_v16 = vld [vmem:[#allocation2 + $0xa70] sm:$0xff]  ;;  %1093 = vmatpush.msrb.mxu0 %v429_v15  ;;  %v306_v15 = vld [vmem:[#allocation2 + $0x498] sm:$0xff] }
 0x139   :  { %v557_v17 = vld [vmem:[#allocation2 + $0xc70] sm:$0xff]  ;;  %1113 = vmatpush.msrb.mxu1 %v493_v16  ;;  %v374_v16 = vld [vmem:[#allocation2 + $0x6b8] sm:$0xff] }
 0x13a   :  { %v625_v18 = vld [vmem:[#allocation2 + $0xe90] sm:$0xff]  ;;  %1133 = vmatpush.msrb.mxu2 %v557_v17  ;;  %v174_v17 = vld [vmem:[#allocation2 + $0x78] sm:$0xff] }
 0x13b   :  { %v425_v20 = vld [vmem:[#allocation2 + $0x850] sm:$0xff]  ;;  %1152 = vmatpush.msrb.mxu3 %v625_v18  ;;  %v238_v18 = vld [vmem:[#allocation2 + $0x278] sm:$0xff] }
 0x13c   :  { %v489_v21 = vld [vmem:[#allocation2 + $0xa50] sm:$0xff]  ;;  %1094 = vmatpush.msrb.mxu0 %v425_v20  ;;  %v302_v20 = vld [vmem:[#allocation2 + $0x478] sm:$0xff] }
 0x13d   :  { %v553_v22 = vld [vmem:[#allocation2 + $0xc50] sm:$0xff]  ;;  %1114 = vmatpush.msrb.mxu1 %v489_v21  ;;  %v370_v21 = vld [vmem:[#allocation2 + $0x698] sm:$0xff] }
 0x13e   :  { %v621_v26 = vld [vmem:[#allocation2 + $0xe70] sm:$0xff]  ;;  %1134 = vmatpush.msrb.mxu2 %v553_v22  ;;  %v170_v22 = vld [vmem:[#allocation2 + $0x58] sm:$0xff] }
 0x13f   :  { %v421_v27 = vld [vmem:[#allocation2 + $0x830] sm:$0xff]  ;;  %1153 = vmatpush.msrb.mxu3 %v621_v26  ;;  %v234_v26 = vld [vmem:[#allocation2 + $0x258] sm:$0xff] }
 0x140   :  { %v485_v1 = vld [vmem:[#allocation2 + $0xa30] sm:$0xff]  ;;  %1095 = vmatpush.msrb.mxu0 %v421_v27  ;;  %v298_v27 = vld [vmem:[#allocation2 + $0x458] sm:$0xff] }
 0x141   :  { %v549_v28 = vld [vmem:[#allocation2 + $0xc30] sm:$0xff]  ;;  %1115 = vmatpush.msrb.mxu1 %v485_v1  ;;  %v366_v1 = vld [vmem:[#allocation2 + $0x678] sm:$0xff] }
 0x142   :  { %v617_v29 = vld [vmem:[#allocation2 + $0xe50] sm:$0xff]  ;;  %1135 = vmatpush.msrb.mxu2 %v549_v28  ;;  %v166_v28 = vld [vmem:[#allocation2 + $0x38] sm:$0xff] }
 0x143   :  { %v417_v32 = vld [vmem:[#allocation2 + $0x810] sm:$0xff]  ;;  %1154 = vmatpush.msrb.mxu3 %v617_v29  ;;  %v230_v29 = vld [vmem:[#allocation2 + $0x238] sm:$0xff] }
 0x144   :  { %v481_v63 = vld [vmem:[#allocation2 + $0xa10] sm:$0xff]  ;;  %1096 = vmatpush.msrb.mxu0 %v417_v32  ;;  %v294_v32 = vld [vmem:[#allocation2 + $0x438] sm:$0xff] }
 0x145   :  { %v545_v7 = vld [vmem:[#allocation2 + $0xc10] sm:$0xff]  ;;  %1116 = vmatpush.msrb.mxu1 %v481_v63  ;;  %1097 = vmatmul.f32.vlgmr.msrb.gmra.mxu0 %v1951_v24  ;;  %v206_v24 = vld [vmem:[#allocation2 + $0x178] sm:$0xff] }
 0x146   :  { %v613_v33 = vld [vmem:[#allocation2 + $0xe30] sm:$0xff]  ;;  %1136 = vmatpush.msrb.mxu2 %v545_v7  ;;  %1161 = vmatpush.msra.mxu0 %v222_v0  ;;  %v362_v63 = vld [vmem:[#allocation2 + $0x658] sm:$0xff] }
 0x147   :  { %1155 = vmatpush.msrb.mxu3 %v613_v33  ;;  %v609_v36 = vld [vmem:[#allocation2 + $0xe10] sm:$0xff]  ;;  %1137 = vmatmul.f32.vlgmr.msrb.gmra.mxu2 %v1946_v19  ;;  %v210_v19 = vld [vmem:[#allocation2 + $0x198] sm:$0xff] }
 0x148   :  { %1181 = vmatpush.msra.mxu1 %v286_v34  ;;  %1201 = vmatpush.msra.mxu2 %v350_v35  ;;  %v162_v7 = vld [vmem:[#allocation2 + $0x18] sm:$0xff] }
 0x149   :  { %1156 = vmatpush.msrb.mxu3 %v609_v36  ;;  %1162 = vmatpush.msra.mxu0 %v218_v37  ;;  %v226_v33 = vld [vmem:[#allocation2 + $0x218] sm:$0xff] }
 0x14a   :  { %1157 = vmatmul.f32.vlgmr.msrb.gmra.mxu3 %v1957_v25  ;;  %1182 = vmatpush.msra.mxu1 %v282_v38  ;;  %v270_v25 = vld [vmem:[#allocation2 + $0x378] sm:$0xff] }
 0x14b   :  { %1202 = vmatpush.msra.mxu2 %v346_v39  ;;  %1221 = vmatpush.msra.mxu3 %v414_v40  ;;  %v290_v0 = vld [vmem:[#allocation2 + $0x418] sm:$0xff] }
 0x14c   :  { %1117 = vmatmul.f32.vlgmr.msrb.gmra.mxu1 %v1963_v30  ;;  %1163 = vmatpush.msra.mxu0 %v214_v41  ;;  %v330_v30 = vld [vmem:[#allocation2 + $0x558] sm:$0xff] }
 0x14d   :  { %1183 = vmatpush.msra.mxu1 %v278_v42  ;;  %1203 = vmatpush.msra.mxu2 %v342_v43  ;;  %v358_v34 = vld [vmem:[#allocation2 + $0x638] sm:$0xff] }
 0x14e   :  { %1222 = vmatpush.msra.mxu3 %v410_v44  ;;  %1164 = vmatpush.msra.mxu0 %v210_v19  ;;  %v478_v35 = vld [vmem:[#allocation2 + $0x9f8] sm:$0xff] }
 0x14f   :  { %1184 = vmatpush.msra.mxu1 %v274_v45  ;;  %1204 = vmatpush.msra.mxu2 %v338_v46  ;;  %v542_v36 = vld [vmem:[#allocation2 + $0xbf8] sm:$0xff] }
 0x150   :  { %1223 = vmatpush.msra.mxu3 %v406_v47  ;;  %1165 = vmatpush.msra.mxu0 %v206_v24  ;;  %v606_v37 = vld [vmem:[#allocation2 + $0xdf8] sm:$0xff] }
 0x151   :  { %1185 = vmatpush.msra.mxu1 %v270_v25  ;;  %1205 = vmatpush.msra.mxu2 %v334_v48  ;;  %v354_v38 = vld [vmem:[#allocation2 + $0x618] sm:$0xff] }
 0x152   :  { %1224 = vmatpush.msra.mxu3 %v402_v49  ;;  %1166 = vmatpush.msra.mxu0 %v202_v50  ;;  %v474_v39 = vld [vmem:[#allocation2 + $0x9d8] sm:$0xff] }
 0x153   :  { %1186 = vmatpush.msra.mxu1 %v266_v51  ;;  %1206 = vmatpush.msra.mxu2 %v330_v30  ;;  %v538_v40 = vld [vmem:[#allocation2 + $0xbd8] sm:$0xff] }
 0x154   :  { %1225 = vmatpush.msra.mxu3 %v398_v52  ;;  %1167 = vmatpush.msra.mxu0 %v198_v53  ;;  %v602_v41 = vld [vmem:[#allocation2 + $0xdd8] sm:$0xff] }
 0x155   :  { %1187 = vmatpush.msra.mxu1 %v262_v54  ;;  %1207 = vmatpush.msra.mxu2 %v326_v55  ;;  %v670_v42 = vld [vmem:[#allocation2 + $0xff8] sm:$0xff] }
 0x156   :  { %1226 = vmatpush.msra.mxu3 %v394_v56  ;;  %1168 = vmatpush.msra.mxu0 %v194_v57  ;;  %v470_v43 = vld [vmem:[#allocation2 + $0x9b8] sm:$0xff] }
 0x157   :  { %1188 = vmatpush.msra.mxu1 %v258_v58  ;;  %1208 = vmatpush.msra.mxu2 %v322_v59  ;;  %v534_v44 = vld [vmem:[#allocation2 + $0xbb8] sm:$0xff]  ;;  %v1993_v59 = vpop.f32.mrf.mxu0 }
 0x158   :  { %1227 = vmatpush.msra.mxu3 %v390_v60  ;;  %1169 = vmatpush.msra.mxu0 %v190_v61  ;;  %v598_v19 = vld [vmem:[#allocation2 + $0xdb8] sm:$0xff] }
 0x159   :  { %1189 = vmatpush.msra.mxu1 %v254_v62  ;;  %1209 = vmatpush.msra.mxu2 %v318_v2  ;;  %v666_v45 = vld [vmem:[#allocation2 + $0xfd8] sm:$0xff] }
 0x15a   :  { %1228 = vmatpush.msra.mxu3 %v386_v3  ;;  %1170 = vmatpush.msra.mxu0 %v186_v4  ;;  %v466_v46 = vld [vmem:[#allocation2 + $0x998] sm:$0xff] }
 0x15b   :  { %1190 = vmatpush.msra.mxu1 %v250_v5  ;;  %1210 = vmatpush.msra.mxu2 %v314_v6  ;;  %v530_v47 = vld [vmem:[#allocation2 + $0xb98] sm:$0xff] }
 0x15c   :  { %1229 = vmatpush.msra.mxu3 %v382_v8  ;;  %1171 = vmatpush.msra.mxu0 %v182_v9  ;;  %v594_v24 = vld [vmem:[#allocation2 + $0xd98] sm:$0xff]  ;;  %v1995_v8 = vpop.f32.mrf.mxu1 }
 0x15d   :  { %1191 = vmatpush.msra.mxu1 %v246_v10  ;;  %1211 = vmatpush.msra.mxu2 %v310_v11  ;;  %v662_v25 = vld [vmem:[#allocation2 + $0xfb8] sm:$0xff] }
 0x15e   :  { %1230 = vmatpush.msra.mxu3 %v378_v12  ;;  %1172 = vmatpush.msra.mxu0 %v178_v13  ;;  %v462_v48 = vld [vmem:[#allocation2 + $0x978] sm:$0xff] }
 0x15f   :  { %1192 = vmatpush.msra.mxu1 %v242_v14  ;;  %1212 = vmatpush.msra.mxu2 %v306_v15  ;;  %v526_v49 = vld [vmem:[#allocation2 + $0xb78] sm:$0xff] }
 0x160   :  { %1231 = vmatpush.msra.mxu3 %v374_v16  ;;  %1173 = vmatpush.msra.mxu0 %v174_v17  ;;  %v590_v50 = vld [vmem:[#allocation2 + $0xd78] sm:$0xff]  ;;  %v1997_v17 = vpop.f32.mrf.mxu2 }
 0x161   :  { %1193 = vmatpush.msra.mxu1 %v238_v18  ;;  %1213 = vmatpush.msra.mxu2 %v302_v20  ;;  %v658_v51 = vld [vmem:[#allocation2 + $0xf98] sm:$0xff] }
 0x162   :  { %1232 = vmatpush.msra.mxu3 %v370_v21  ;;  %1174 = vmatpush.msra.mxu0 %v170_v22  ;;  %v458_v30 = vld [vmem:[#allocation2 + $0x958] sm:$0xff] }
 0x163   :  { %1194 = vmatpush.msra.mxu1 %v234_v26  ;;  %1214 = vmatpush.msra.mxu2 %v298_v27  ;;  %v522_v52 = vld [vmem:[#allocation2 + $0xb58] sm:$0xff]  ;;  %v1999_v26 = vpop.f32.mrf.mxu0 }
 0x164   :  { %1233 = vmatpush.msra.mxu3 %v366_v1  ;;  %1175 = vmatpush.msra.mxu0 %v166_v28  ;;  %v586_v53 = vld [vmem:[#allocation2 + $0xd58] sm:$0xff] }
 0x165   :  { %1195 = vmatpush.msra.mxu1 %v230_v29  ;;  %1215 = vmatpush.msra.mxu2 %v294_v32  ;;  %v654_v54 = vld [vmem:[#allocation2 + $0xf78] sm:$0xff]  ;;  %v2001_v29 = vpop.f32.mrf.mxu3 }
 0x166   :  { %1234 = vmatpush.msra.mxu3 %v362_v63  ;;  %1176 = vmatpush.msra.mxu0 %v162_v7  ;;  %v454_v55 = vld [vmem:[#allocation2 + $0x938] sm:$0xff]  ;;  %v1615_v63 = vld [vmem:[%s2100_s0 + $0x10] sm:$0xff] }
 0x167   :  { %1196 = vmatpush.msra.mxu1 %v226_v33  ;;  %1216 = vmatpush.msra.mxu2 %v290_v0  ;;  %v518_v56 = vld [vmem:[#allocation2 + $0xb38] sm:$0xff]  ;;  %v2006_v33 = vld [vmem:[#allocation4] sm:$0xf]  ;;  %v2008_v0 = vpop.f32.mrf.mxu1 }
 0x168   :  { %1235 = vmatpush.msra.mxu3 %v358_v34  ;;  %1241 = vmatpush.msrb.mxu0 %v478_v35  ;;  %v582_v57 = vld [vmem:[#allocation2 + $0xd38] sm:$0xff] }
 0x169   :  { %1261 = vmatpush.msrb.mxu1 %v542_v36  ;;  %1281 = vmatpush.msrb.mxu2 %v606_v37  ;;  %v650_v58 = vld [vmem:[#allocation2 + $0xf58] sm:$0xff] }
 0x16a   :  { %1236 = vmatpush.msra.mxu3 %v354_v38  ;;  %1242 = vmatpush.msrb.mxu0 %v474_v39  ;;  %v450_v60 = vld [vmem:[#allocation2 + $0x918] sm:$0xff] }
 0x16b   :  { %1262 = vmatpush.msrb.mxu1 %v538_v40  ;;  %1282 = vmatpush.msrb.mxu2 %v602_v41  ;;  %v514_v61 = vld [vmem:[#allocation2 + $0xb18] sm:$0xff]  ;;  %v673_v40 = vperm.slane %v2006_v33, 0 }
 0x16c   :  { %1301 = vmatpush.msrb.mxu3 %v670_v42  ;;  %1243 = vmatpush.msrb.mxu0 %v470_v43  ;;  %v578_v62 = vld [vmem:[#allocation2 + $0xd18] sm:$0xff]  ;;  %v674_v43 = vperm.slane %v2006_v33, 1 }
 0x16d   :  { %1263 = vmatpush.msrb.mxu1 %v534_v44  ;;  %1283 = vmatpush.msrb.mxu2 %v598_v19  ;;  %v646_v2 = vld [vmem:[#allocation2 + $0xf38] sm:$0xff]  ;;  %v2016_v44 = vpop.f32.mrf.mxu2 }
 0x16e   :  { %1302 = vmatpush.msrb.mxu3 %v666_v45  ;;  %1244 = vmatpush.msrb.mxu0 %v466_v46  ;;  %v446_v3 = vld [vmem:[#allocation2 + $0x8f8] sm:$0xff]  ;;  %v858_v45 = vpop.f32.mrf.mxu0 }
 0x16f   :  { %1264 = vmatpush.msrb.mxu1 %v530_v47  ;;  %1284 = vmatpush.msrb.mxu2 %v594_v24  ;;  %v510_v4 = vld [vmem:[#allocation2 + $0xaf8] sm:$0xff] }
 0x170   :  { %1303 = vmatpush.msrb.mxu3 %v662_v25  ;;  %1245 = vmatpush.msrb.mxu0 %v462_v48  ;;  %v574_v5 = vld [vmem:[#allocation2 + $0xcf8] sm:$0xff]  ;;  %v699_v25 = vadd.f32 %v1993_v59, %v673_v40  ;;  %v1354_v59 = vld [vmem:[#allocation6 + $0xe8] sm:$0xff] }
 0x171   :  { %1265 = vmatpush.msrb.mxu1 %v526_v49  ;;  %1285 = vmatpush.msrb.mxu2 %v590_v50  ;;  %v642_v6 = vld [vmem:[#allocation2 + $0xf18] sm:$0xff]  ;;  %v859_v50 = vadd.f32 %v858_v45, %v674_v43  ;;  %v1366_v40 = vld [vmem:[#allocation6 + $0x148] sm:$0xff]  ;;  %v1365_v43 = vld [vmem:[#allocation6 + $0x140] sm:$0xff] }
 0x172   :  { %1304 = vmatpush.msrb.mxu3 %v658_v51  ;;  %1246 = vmatpush.msrb.mxu0 %v458_v30  ;;  %v442_v9 = vld [vmem:[#allocation2 + $0x8d8] sm:$0xff]  ;;  %v2020_v51 = vpop.f32.mrf.mxu3  ;;  %v1617_v30 = vld [vmem:[%s2100_s0 + $0x30] sm:$0xff] }
 0x173   :  { %1266 = vmatpush.msrb.mxu1 %v522_v52  ;;  %1286 = vmatpush.msrb.mxu2 %v586_v53  ;;  %v506_v10 = vld [vmem:[#allocation2 + $0xad8] sm:$0xff] }
 0x174   :  { %1305 = vmatpush.msrb.mxu3 %v654_v54  ;;  %1247 = vmatpush.msrb.mxu0 %v454_v55  ;;  %v570_v11 = vld [vmem:[#allocation2 + $0xcd8] sm:$0xff]  ;;  %v719_v55 = vadd.f32 %v1995_v8, %v699_v25 }
 0x175   :  { %1267 = vmatpush.msrb.mxu1 %v518_v56  ;;  %1287 = vmatpush.msrb.mxu2 %v582_v57  ;;  %v638_v12 = vld [vmem:[#allocation2 + $0xef8] sm:$0xff]  ;;  %v1618_v56 = vld [vmem:[%s2100_s0 + $0x20] sm:$0xff] }
 0x176   :  { %1306 = vmatpush.msrb.mxu3 %v650_v58  ;;  %1248 = vmatpush.msrb.mxu0 %v450_v60  ;;  %v438_v13 = vld [vmem:[#allocation2 + $0x8b8] sm:$0xff]  ;;  %v1338_v58 = vld [vmem:[#allocation6 + $0x68] sm:$0xff] }
 0x177   :  { %1268 = vmatpush.msrb.mxu1 %v514_v61  ;;  %1288 = vmatpush.msrb.mxu2 %v578_v62  ;;  %v502_v14 = vld [vmem:[#allocation2 + $0xab8] sm:$0xff]  ;;  %v898_v61 = vpop.f32.mrf.mxu2 }
 0x178   :  { %1307 = vmatpush.msrb.mxu3 %v646_v2  ;;  %1249 = vmatpush.msrb.mxu0 %v446_v3  ;;  %v566_v15 = vld [vmem:[#allocation2 + $0xcb8] sm:$0xff]  ;;  %v1620_v2 = vld [vmem:[%s2100_s0 + $0x28] sm:$0xff] }
 0x179   :  { %1269 = vmatpush.msrb.mxu1 %v510_v4  ;;  %1289 = vmatpush.msrb.mxu2 %v574_v5  ;;  %v634_v16 = vld [vmem:[#allocation2 + $0xed8] sm:$0xff]  ;;  %v1337_v3 = vld [vmem:[#allocation6 + $0x60] sm:$0xff]  ;;  %v1370_v5 = vld [vmem:[#allocation6 + $0x168] sm:$0xff] }
 0x17a   :  { %1308 = vmatpush.msrb.mxu3 %v642_v6  ;;  %1250 = vmatpush.msrb.mxu0 %v442_v9  ;;  %v434_v18 = vld [vmem:[#allocation2 + $0x898] sm:$0xff]  ;;  %v1353_v4 = vld [vmem:[#allocation6 + $0xe0] sm:$0xff]  ;;  %v739_v6 = vadd.f32 %v1997_v17, %v719_v55  ;;  %v938_v17 = vpop.f32.mrf.mxu0 }
 0x17b   :  { %1270 = vmatpush.msrb.mxu1 %v506_v10  ;;  %1290 = vmatpush.msrb.mxu2 %v570_v11  ;;  %v498_v20 = vld [vmem:[#allocation2 + $0xa98] sm:$0xff]  ;;  %v918_v11 = vpop.f32.mrf.mxu3 }
 0x17c   :  { %1309 = vmatpush.msrb.mxu3 %v638_v12  ;;  %1251 = vmatpush.msrb.mxu0 %v438_v13  ;;  %v562_v21 = vld [vmem:[#allocation2 + $0xc98] sm:$0xff]  ;;  %v1369_v12 = vld [vmem:[#allocation6 + $0x160] sm:$0xff] }
 0x17d   :  { %1271 = vmatpush.msrb.mxu1 %v502_v14  ;;  %v630_v22 = vld [vmem:[#allocation2 + $0xeb8] sm:$0xff]  ;;  %1291 = vmatpush.msrb.mxu2 %v566_v15 }
 0x17e   :  { %1310 = vmatpush.msrb.mxu3 %v634_v16  ;;  %v430_v27 = vld [vmem:[#allocation2 + $0x878] sm:$0xff]  ;;  %1252 = vmatpush.msrb.mxu0 %v434_v18  ;;  %v759_v16 = vadd.f32 %v2001_v29, %v739_v6 }
 0x17f   :  { %1272 = vmatpush.msrb.mxu1 %v498_v20  ;;  %v494_v1 = vld [vmem:[#allocation2 + $0xa78] sm:$0xff]  ;;  %1292 = vmatpush.msrb.mxu2 %v562_v21  ;;  %v1334_v20 = vld [vmem:[#allocation6 + $0x48] sm:$0xff] }
 0x180   :  { %v558_v28 = vld [vmem:[#allocation2 + $0xc78] sm:$0xff]  ;;  %1311 = vmatpush.msrb.mxu3 %v630_v22  ;;  %1217 = vmatmul.f32.vlgmr.msra.gmra.mxu2 %v1615_v63  ;;  %v1350_v21 = vld [vmem:[#allocation6 + $0xc8] sm:$0xff] }
 0x181   :  { %v626_v32 = vld [vmem:[#allocation2 + $0xe98] sm:$0xff]  ;;  %1253 = vmatpush.msrb.mxu0 %v430_v27  ;;  %1273 = vmatpush.msrb.mxu1 %v494_v1  ;;  %v1333_v27 = vld [vmem:[#allocation6 + $0x40] sm:$0xff] }
 0x182   :  { %v426_v7 = vld [vmem:[#allocation2 + $0x858] sm:$0xff]  ;;  %1293 = vmatpush.msrb.mxu2 %v558_v28  ;;  %1312 = vmatpush.msrb.mxu3 %v626_v32  ;;  %v1349_v1 = vld [vmem:[#allocation6 + $0xc0] sm:$0xff]  ;;  %v779_v28 = vadd.f32 %v1999_v26, %v759_v16 }
 0x183   :  { %v490_v34 = vld [vmem:[#allocation2 + $0xa58] sm:$0xff]  ;;  %1177 = vmatmul.f32.vlgmr.msra.gmra.mxu0 %v1979_v23  ;;  %1197 = vmatmul.f32.vlgmr.msra.gmra.mxu1 %v1986_v31  ;;  %v878_v31 = vpop.f32.mrf.mxu1  ;;  %v1329_v26 = vld [vmem:[#allocation6 + $0x20] sm:$0xff] }
 0x184   :  { %v554_v35 = vld [vmem:[#allocation2 + $0xc58] sm:$0xff]  ;;  %1254 = vmatpush.msrb.mxu0 %v426_v7  ;;  %1274 = vmatpush.msrb.mxu1 %v490_v34  ;;  %v879_v60 = vadd.f32 %v878_v31, %v859_v50  ;;  %v1326_v31 = vld [vmem:[#allocation6 + $0x8] sm:$0xff] }
 0x185   :  { %v622_v36 = vld [vmem:[#allocation2 + $0xe78] sm:$0xff]  ;;  %1294 = vmatpush.msrb.mxu2 %v554_v35 }
 0x186   :  { %v1616_v37 = vld [vmem:[%s2100_s0 + $0x18] sm:$0xff]  ;;  %1313 = vmatpush.msrb.mxu3 %v622_v36  ;;  %v899_v8 = vadd.f32 %v898_v61, %v879_v60  ;;  %v799_v36 = vadd.f32 %v2008_v0, %v779_v28  ;;  %v998_v0 = vpop.f32.mrf.mxu3  ;;  %v1382_v28 = vld [vmem:[#allocation6 + $0x1c8] sm:$0xff] }
 0x187   :  { %1237 = vmatmul.f32.vlgmr.msra.gmra.mxu3 %v1616_v37  ;;  %v422_v38 = vld [vmem:[#allocation2 + $0x838] sm:$0xff] }
 0x188   :  { %v486_v39 = vld [vmem:[#allocation2 + $0xa38] sm:$0xff]  ;;  %1255 = vmatpush.msrb.mxu0 %v422_v38  ;;  %v919_v18 = vadd.f32 %v918_v11, %v899_v8  ;;  %v1330_v38 = vld [vmem:[#allocation6 + $0x28] sm:$0xff] }
 0x189   :  { %v550_v41 = vld [vmem:[#allocation2 + $0xc38] sm:$0xff]  ;;  %1275 = vmatpush.msrb.mxu1 %v486_v39  ;;  %v1346_v39 = vld [vmem:[#allocation6 + $0xa8] sm:$0xff] }
 0x18a   :  { %v618_v42 = vld [vmem:[#allocation2 + $0xe58] sm:$0xff]  ;;  %1295 = vmatpush.msrb.mxu2 %v550_v41  ;;  %v939_v32 = vadd.f32 %v938_v17, %v919_v18  ;;  %v978_v41 = vpop.f32.mrf.mxu2 }
 0x18b   :  { %v418_v23 = vld [vmem:[#allocation2 + $0x818] sm:$0xff]  ;;  %1314 = vmatpush.msrb.mxu3 %v618_v42  ;;  %v958_v29 = vpop.f32.mrf.mxu1  ;;  %v1345_v42 = vld [vmem:[#allocation6 + $0xa0] sm:$0xff] }
 0x18c   :  { %v482_v19 = vld [vmem:[#allocation2 + $0xa18] sm:$0xff]  ;;  %1256 = vmatpush.msrb.mxu0 %v418_v23  ;;  %v959_v37 = vadd.f32 %v958_v29, %v939_v32  ;;  %v819_v23 = vadd.f32 %v2016_v44, %v799_v36  ;;  %v1325_v44 = vld [vmem:[#allocation6] sm:$0xff]  ;;  %v1378_v29 = vld [vmem:[#allocation6 + $0x1a8] sm:$0xff] }
 0x18d   :  { %v546_v46 = vld [vmem:[#allocation2 + $0xc18] sm:$0xff]  ;;  %1276 = vmatpush.msrb.mxu1 %v482_v19  ;;  %1257 = vmatmul.f32.vlgmr.msrb.gmra.mxu0 %v1618_v56  ;;  %v1361_v56 = vld [vmem:[#allocation6 + $0x120] sm:$0xff] }
 0x18e   :  { %v614_v47 = vld [vmem:[#allocation2 + $0xe38] sm:$0xff]  ;;  %1296 = vmatpush.msrb.mxu2 %v546_v46  ;;  %1277 = vmatmul.f32.vlgmr.msrb.gmra.mxu1 %v1620_v2  ;;  %v979_v19 = vadd.f32 %v978_v41, %v959_v37  ;;  %v1385_v2 = vld [vmem:[#allocation6 + $0x1e0] sm:$0xff]  ;;  %v1374_v37 = vld [vmem:[#allocation6 + $0x188] sm:$0xff] }
 0x18f   :  { %v1340_v24 = vld [vmem:[#allocation6 + $0x78] sm:$0xff]  ;;  %1315 = vmatpush.msrb.mxu3 %v614_v47  ;;  %1297 = vmatmul.f32.vlgmr.msrb.gmra.mxu2 %v1617_v30  ;;  %v1339_v52 = vld [vmem:[#allocation6 + $0x70] sm:$0xff]  ;;  %v1342_v30 = vld [vmem:[#allocation6 + $0x88] sm:$0xff]  ;;  %v1018_v6 = vpop.f32.mrf.mxu0 }
 0x190   :  { %v1356_v48 = vld [vmem:[#allocation6 + $0xf8] sm:$0xff]  ;;  %1393 = vmatpush.msra.mxu0 %v1340_v24  ;;  %v1355_v53 = vld [vmem:[#allocation6 + $0xf0] sm:$0xff]  ;;  %v999_v50 = vadd.f32 %v998_v0, %v979_v19  ;;  %v1381_v32 = vld [vmem:[#allocation6 + $0x1c0] sm:$0xff] }
 0x191   :  { %v610_v49 = vld [vmem:[#allocation2 + $0xe18] sm:$0xff]  ;;  %1413 = vmatpush.msra.mxu1 %v1356_v48 }
 0x192   :  { %1316 = vmatpush.msrb.mxu3 %v610_v49  ;;  %v1372_v54 = vld [vmem:[#allocation6 + $0x178] sm:$0xff]  ;;  %1394 = vmatpush.msra.mxu0 %v1339_v52  ;;  %v1371_v62 = vld [vmem:[#allocation6 + $0x170] sm:$0xff]  ;;  %v839_v49 = vadd.f32 %v2020_v51, %v819_v23  ;;  %v1341_v52 = vld [vmem:[#allocation6 + $0x80] sm:$0xff]  ;;  %v1322_v55 = vmax.f32 %v999_v50, 0.0 }
 0x193   :  { %v1619_v57 = vld [vmem:[%s2100_s0 + $0x38] sm:$0xff]  ;;  %1414 = vmatpush.msra.mxu1 %v1355_v53  ;;  %1433 = vmatpush.msra.mxu2 %v1372_v54  ;;  %v1362_v53 = vld [vmem:[#allocation6 + $0x128] sm:$0xff] }
 0x194   :  { %1317 = vmatmul.f32.vlgmr.msrb.gmra.mxu3 %v1619_v57  ;;  %1395 = vmatpush.msra.mxu0 %v1338_v58  ;;  %v1336_v9 = vld [vmem:[#allocation6 + $0x58] sm:$0xff]  ;;  %v1335_v13 = vld [vmem:[#allocation6 + $0x50] sm:$0xff]  ;;  %v1321_v54 = vmax.f32 %v839_v49, 0.0  ;;  %v1358_v58 = vld [vmem:[#allocation6 + $0x108] sm:$0xff]  ;;  %v1058_v11 = vpop.f32.mrf.mxu2 }
 0x195   :  { %1415 = vmatpush.msra.mxu1 %v1354_v59  ;;  %v1352_v10 = vld [vmem:[#allocation6 + $0xd8] sm:$0xff]  ;;  %1434 = vmatpush.msra.mxu2 %v1371_v62  ;;  %v1351_v14 = vld [vmem:[#allocation6 + $0xd0] sm:$0xff]  ;;  %v1357_v59 = vld [vmem:[#allocation6 + $0x100] sm:$0xff] }
 0x196   :  { %1396 = vmatpush.msra.mxu0 %v1337_v3  ;;  %v1368_v15 = vld [vmem:[#allocation6 + $0x158] sm:$0xff]  ;;  %v1367_v22 = vld [vmem:[#allocation6 + $0x150] sm:$0xff]  ;;  %v1386_v62 = vld [vmem:[#allocation6 + $0x1e8] sm:$0xff] }
 0x197   :  { %1416 = vmatpush.msra.mxu1 %v1353_v4  ;;  %1435 = vmatpush.msra.mxu2 %v1370_v5  ;;  %v1332_v63 = vld [vmem:[#allocation6 + $0x38] sm:$0xff]  ;;  %v1331_v34 = vld [vmem:[#allocation6 + $0x30] sm:$0xff]  ;;  %v675_v4 = vperm.slane %v2006_v33, 2 }
 0x198   :  { %1397 = vmatpush.msra.mxu0 %v1336_v9  ;;  %v1348_v7 = vld [vmem:[#allocation6 + $0xb8] sm:$0xff]  ;;  %v1347_v35 = vld [vmem:[#allocation6 + $0xb0] sm:$0xff]  ;;  %v1038_v9 = vpop.f32.mrf.mxu1 }
 0x199   :  { %1417 = vmatpush.msra.mxu1 %v1352_v10  ;;  %1436 = vmatpush.msra.mxu2 %v1369_v12  ;;  %v1328_v45 = vld [vmem:[#allocation6 + $0x18] sm:$0xff]  ;;  %v1327_v24 = vld [vmem:[#allocation6 + $0x10] sm:$0xff]  ;;  %v1019_v8 = vadd.f32 %v1018_v6, %v675_v4  ;;  %v1605_v4 = vld [vmem:[#allocation7] ss:$0 sm:$0xff] }
 0x19a   :  { %1398 = vmatpush.msra.mxu0 %v1335_v13  ;;  %v1344_v46 = vld [vmem:[#allocation6 + $0x98] sm:$0xff]  ;;  %v1343_v25 = vld [vmem:[#allocation6 + $0x90] sm:$0xff]  ;;  %v1078_v13 = vpop.f32.mrf.mxu3 }
 0x19b   :  { %1418 = vmatpush.msra.mxu1 %v1351_v14  ;;  %1437 = vmatpush.msra.mxu2 %v1368_v15  ;;  %v1364_v47 = vld [vmem:[#allocation6 + $0x138] sm:$0xff]  ;;  %v1363_v48 = vld [vmem:[#allocation6 + $0x130] sm:$0xff]  ;;  %v1039_v10 = vadd.f32 %v1038_v9, %v1019_v8 }
 0x19c   :  { %1399 = vmatpush.msra.mxu0 %v1334_v20  ;;  %v1360_v51 = vld [vmem:[#allocation6 + $0x118] sm:$0xff]  ;;  %v1359_v57 = vld [vmem:[#allocation6 + $0x110] sm:$0xff] }
 0x19d   :  { %1419 = vmatpush.msra.mxu1 %v1350_v21  ;;  %1438 = vmatpush.msra.mxu2 %v1367_v22  ;;  %v1388_v60 = vld [vmem:[#allocation6 + $0x1f8] sm:$0xff]  ;;  %v1387_v61 = vld [vmem:[#allocation6 + $0x1f0] sm:$0xff]  ;;  %v1059_v12 = vadd.f32 %v1058_v11, %v1039_v10 }
 0x19e   :  { %1400 = vmatpush.msra.mxu0 %v1333_v27  ;;  %1453 = vmatpush.msra.mxu3 %v1388_v60  ;;  %v1384_v3 = vld [vmem:[#allocation6 + $0x1d8] sm:$0xff]  ;;  %v1383_v5 = vld [vmem:[#allocation6 + $0x1d0] sm:$0xff] }
 0x19f   :  { %1420 = vmatpush.msra.mxu1 %v1349_v1  ;;  %1439 = vmatpush.msra.mxu2 %v1366_v40  ;;  %v1079_v14 = vadd.f32 %v1078_v13, %v1059_v12  ;;  %v1375_v36 = vld [vmem:[#allocation6 + $0x190] sm:$0xff] }
 0x1a0   :  { %1401 = vmatpush.msra.mxu0 %v1332_v63  ;;  %1454 = vmatpush.msra.mxu3 %v1387_v61  ;;  %v1380_v63 = vld [vmem:[#allocation6 + $0x1b8] sm:$0xff]  ;;  %v1476_v61 = vld [vmem:[%s2105_s5 + $0x10] sm:$0xff] }
 0x1a1   :  { %1421 = vmatpush.msra.mxu1 %v1348_v7  ;;  %1440 = vmatpush.msra.mxu2 %v1365_v43  ;;  %v1379_v7 = vld [vmem:[#allocation6 + $0x1b0] sm:$0xff] }
 0x1a2   :  { %1402 = vmatpush.msra.mxu0 %v1331_v34  ;;  %1455 = vmatpush.msra.mxu3 %v1386_v62  ;;  %v1377_v34 = vld [vmem:[#allocation6 + $0x1a0] sm:$0xff]  ;;  %v1477_v60 = vld [vmem:[%s2105_s5 + $0x18] sm:$0xff] }
 0x1a3   :  { %1422 = vmatpush.msra.mxu1 %v1347_v35  ;;  %1441 = vmatpush.msra.mxu2 %v1364_v47  ;;  %v1376_v35 = vld [vmem:[#allocation6 + $0x198] sm:$0xff]  ;;  %v1475_v62 = vld [vmem:[%s2105_s5 + $0x8] sm:$0xff] }
 0x1a4   :  { %1403 = vmatpush.msra.mxu0 %v1330_v38  ;;  %1456 = vmatpush.msra.mxu3 %v1385_v2  ;;  %v1373_v38 = vld [vmem:[#allocation6 + $0x180] sm:$0xff] }
 0x1a5   :  { %1423 = vmatpush.msra.mxu1 %v1346_v39  ;;  %1442 = vmatpush.msra.mxu2 %v1363_v48  ;;  %v676_v39 = vperm.slane %v2006_v33, 3  ;;  %v1489_v33 = vld [vmem:[%s2105_s5 + $0x78] sm:$0xff]  ;;  %v1474_v2 = vld [vmem:[%s2105_s5] sm:$0xff] }
 0x1a6   :  { %1404 = vmatpush.msra.mxu0 %v1329_v26  ;;  %1457 = vmatpush.msra.mxu3 %v1384_v3  ;;  %v1516_v3 = vld [vmem:[%s2107_s7 + $0x8] sm:$0xff] }
 0x1a7   :  { %1424 = vmatpush.msra.mxu1 %v1345_v42  ;;  %1443 = vmatpush.msra.mxu2 %v1362_v53  ;;  %v1485_v53 = vld [vmem:[%s2105_s5 + $0x58] sm:$0xff] }
 0x1a8   :  { %1405 = vmatpush.msra.mxu0 %v1328_v45  ;;  %1458 = vmatpush.msra.mxu3 %v1383_v5 }
 0x1a9   :  { %1425 = vmatpush.msra.mxu1 %v1344_v46  ;;  %1444 = vmatpush.msra.mxu2 %v1361_v56  ;;  %v1482_v56 = vld [vmem:[%s2105_s5 + $0x40] sm:$0xff] }
 0x1aa   :  { %1406 = vmatpush.msra.mxu0 %v1327_v24  ;;  %1459 = vmatpush.msra.mxu3 %v1382_v28 }
 0x1ab   :  { %1426 = vmatpush.msra.mxu1 %v1343_v25  ;;  %1445 = vmatpush.msra.mxu2 %v1360_v51  ;;  %v1481_v51 = vld [vmem:[%s2105_s5 + $0x38] sm:$0xff] }
 0x1ac   :  { %1407 = vmatpush.msra.mxu0 %v1326_v31  ;;  %1460 = vmatpush.msra.mxu3 %v1381_v32 }
 0x1ad   :  { %1427 = vmatpush.msra.mxu1 %v1342_v30  ;;  %1446 = vmatpush.msra.mxu2 %v1359_v57  ;;  %v1488_v30 = vld [vmem:[%s2105_s5 + $0x70] sm:$0xff] }
 0x1ae   :  { %1408 = vmatpush.msra.mxu0 %v1325_v44  ;;  %1461 = vmatpush.msra.mxu3 %v1380_v63  ;;  %v1487_v44 = vld [vmem:[%s2105_s5 + $0x68] sm:$0xff]  ;;  %v1480_v57 = vld [vmem:[%s2105_s5 + $0x30] sm:$0xff] }
 0x1af   :  { %1428 = vmatpush.msra.mxu1 %v1341_v52  ;;  %1409 = vmatmul.f32.vlgmr.msra.gmra.mxu0 %v1321_v54  ;;  %v1486_v52 = vld [vmem:[%s2105_s5 + $0x60] sm:$0xff]  ;;  %v1484_v54 = vld [vmem:[%s2105_s5 + $0x50] sm:$0xff] }
 0x1b0   :  { %1429 = vmatmul.f32.vlgmr.msra.gmra.mxu1 %v1322_v55  ;;  %1447 = vmatpush.msra.mxu2 %v1358_v58  ;;  %v1483_v55 = vld [vmem:[%s2105_s5 + $0x48] sm:$0xff] }
 0x1b1   :  { %1462 = vmatpush.msra.mxu3 %v1379_v7  ;;  %1494 = vmatpush.msrb.mxu0 %v1489_v33  ;;  %v1479_v58 = vld [vmem:[%s2105_s5 + $0x28] sm:$0xff] }
 0x1b2   :  { %1448 = vmatpush.msra.mxu2 %v1357_v59  ;;  %v1478_v59 = vld [vmem:[%s2105_s5 + $0x20] sm:$0xff]  ;;  %1539 = vmatpush.msrb.mxu1 %v1516_v3 }
 0x1b3   :  { %1463 = vmatpush.msra.mxu3 %v1378_v29  ;;  %1495 = vmatpush.msrb.mxu0 %v1488_v30 }
 0x1b5   :  { %1464 = vmatpush.msra.mxu3 %v1377_v34  ;;  %1496 = vmatpush.msrb.mxu0 %v1487_v44  ;;  %v1608_v34 = vld [vmem:[#allocation13] ss:$0 sm:$0xff] }
 0x1b7   :  { %1465 = vmatpush.msra.mxu3 %v1376_v35  ;;  %1497 = vmatpush.msrb.mxu0 %v1486_v52 }
 0x1b9   :  { %1466 = vmatpush.msra.mxu3 %v1375_v36  ;;  %1498 = vmatpush.msrb.mxu0 %v1485_v53 }
 0x1bb   :  { %1467 = vmatpush.msra.mxu3 %v1374_v37  ;;  %1499 = vmatpush.msrb.mxu0 %v1484_v54 }
 0x1bd   :  { %1468 = vmatpush.msra.mxu3 %v1373_v38  ;;  %1500 = vmatpush.msrb.mxu0 %v1483_v55 }
 0x1bf   :  { %1501 = vmatpush.msrb.mxu0 %v1482_v56 }
 0x1c1   :  { %1502 = vmatpush.msrb.mxu0 %v1481_v51 }
 0x1c2   :  { %v1098_v15 = vpop.f32.mrf.mxu0 }
 0x1c3   :  { %v1099_v16 = vadd.f32 %v1098_v15, %v1079_v14  ;;  %1503 = vmatpush.msrb.mxu0 %v1480_v57  ;;  %v1515_v15 = vld [vmem:[%s2107_s7] sm:$0xff] }
 0x1c4   :  { %1540 = vmatpush.msrb.mxu1 %v1515_v15 }
 0x1c5   :  { %1504 = vmatpush.msrb.mxu0 %v1479_v58 }
 0x1c7   :  { %1505 = vmatpush.msrb.mxu0 %v1478_v59 }
 0x1c9   :  { %v1118_v18 = vpop.f32.mrf.mxu1  ;;  %1506 = vmatpush.msrb.mxu0 %v1477_v60 }
 0x1ca   :  { %v1119_v20 = vadd.f32 %v1118_v18, %v1099_v16  ;;  %v1138_v21 = vpop.f32.mrf.mxu2  ;;  %v1606_v16 = vld [vmem:[#allocation9] ss:$0 sm:$0xff] }
 0x1cb   :  { %1507 = vmatpush.msrb.mxu0 %v1476_v61 }
 0x1cc   :  { %v1139_v17 = vadd.f32 %v1138_v21, %v1119_v20 }
 0x1cd   :  { %v1158_v22 = vpop.f32.mrf.mxu3  ;;  %1508 = vmatpush.msrb.mxu0 %v1475_v62 }
 0x1ce   :  { %v1159_v27 = vadd.f32 %v1158_v22, %v1139_v17  ;;  %v1550_v17 = vld [vmem:[#allocation12] sm:$0xff]  ;;  %v1607_v22 = vld [vmem:[#allocation10] ss:$0 sm:$0xff] }
 0x1cf   :  { %1509 = vmatpush.msrb.mxu0 %v1474_v2  ;;  %1574 = vmatpush.msrb.mxu2 %v1550_v17 }
 0x1d0   :  { %v1323_v1 = vmax.f32 %v1159_v27, 0.0 }
 0x1d2   :  { %1449 = vmatmul.f32.vlgmr.msra.gmra.mxu2 %v1323_v1 }
 0x200   :  { %v1178_v40 = vpop.f32.mrf.mxu0  ;;  %v1198_v26 = vpop.f32.mrf.mxu1 }
 0x201   :  { %v1179_v41 = vadd.f32 %v1178_v40, %v676_v39 }
 0x203   :  { %v1199_v42 = vadd.f32 %v1198_v26, %v1179_v41  ;;  %v1218_v43 = vpop.f32.mrf.mxu2 }
 0x205   :  { %v1219_v23 = vadd.f32 %v1218_v43, %v1199_v42 }
 0x20a   :  { %v1238_v19 = vpop.f32.mrf.mxu3  ;;  %v1258_v46 = vpop.f32.mrf.mxu0 }
 0x20b   :  { %v1239_v45 = vadd.f32 %v1238_v19, %v1219_v23  ;;  %v1278_v47 = vpop.f32.mrf.mxu1 }
 0x20d   :  { %v1259_v0 = vadd.f32 %v1258_v46, %v1239_v45 }
 0x20f   :  { %v1279_v24 = vadd.f32 %v1278_v47, %v1259_v0 }
 0x212   :  { %v1298_v25 = vpop.f32.mrf.mxu2 }
 0x213   :  { %v1299_v48 = vadd.f32 %v1298_v25, %v1279_v24 }
 0x217   :  { %v1318_v49 = vpop.f32.mrf.mxu3 }
 0x218   :  { %v1319_v50 = vadd.f32 %v1318_v49, %v1299_v48 }
 0x21a   :  { %v1324_v31 = vmax.f32 %v1319_v50, 0.0 }
 0x21c   :  { %1469 = vmatmul.f32.vlgmr.msra.gmra.mxu3 %v1324_v31 }
 0x22c   :  { %v1410_v5 = vpop.f32.mrf.mxu0 }
 0x22d   :  { %v1411_v6 = vadd.f32 %v1605_v4, %v1410_v5  ;;  %v1430_v8 = vpop.f32.mrf.mxu1 }
 0x22f   :  { %v1431_v10 = vadd.f32 %v1430_v8, %v1411_v6 }
 0x255   :  { %v1450_v9 = vpop.f32.mrf.mxu2 }
 0x256   :  { %v1451_v11 = vadd.f32 %v1450_v9, %v1431_v10 }
 0x29f   :  { %v1470_v12 = vpop.f32.mrf.mxu3 }
 0x2a0   :  { %v1471_v13 = vadd.f32 %v1470_v12, %v1451_v11 }
 0x2a2   :  { %v1473_v14 = vmax.f32 %v1471_v13, 0.0 }
 0x2a4   :  { %1510 = vmatmul.f32.vlgmr.msrb.gmra.mxu0 %v1473_v14 }
 0x321   :  { %v1511_v18 = vpop.f32.mrf.mxu0 }
 0x322   :  { %v1512_v20 = vadd.f32 %v1606_v16, %v1511_v18 }
 0x324   :  { %v1514_v21 = vmax.f32 %v1512_v20, 0.0 }
 0x326   :  { %1591 = vmatmul.msk.f32.vlgmr.msrb.gmra.mxu1 %vm1521_vm0, %v1514_v21 }
 0x3a3   :  { %v1542_v27 = vpop.f32.mrf.mxu1 }
 0x3a4   :  { %v1543_v1 = vadd.f32 %v1607_v22, %v1542_v27 }
 0x3a6   :  { %v1545_v28 = vsub.f32 0.0, %v1543_v1 }
 0x3a8   :  { %v1546_v32 = vmul.f32 1.442695, %v1545_v28 }
 0x3aa   :  { %1609 = vpow2.f32 %v1546_v32 }
 0x3b0   :  { %v1610_v63 = vpop.eup %1609 }
 0x3b1   :  { %v1548_v7 = vadd.f32 1.0, %v1610_v63 }
 0x3b3   :  { %1611 = vrcp.f32 %v1548_v7 }
 0x3b9   :  { %v1612_v29 = vpop.eup %1611 }
 0x3ba   :  { %1592 = vmatmul.msk.f32.vlgmr.msrb.gmra.mxu2 %vm1555_vm1, %v1612_v29 }
 0x43d   :  { %v1576_v35 = vpop.f32.mrf.mxu2 }
 0x43e   :  { %v1577_v36 = vadd.f32 %v1608_v34, %v1576_v35 }
 0x440   :  { %v1579_v37 = vmax.f32 %v1577_v36, 0.0 }
 0x442   :  { %1581 = vst.msk [vmem:[%s2111_s11] sm:$0x1] %vm1580_vm2, %v1579_v37 }
 0x443   :  { %1586 = vsyncpa [#allocation3], 1 }
 0x444   :  { %1587 = vsyncpa [#allocation5], 1 }
 0x445   :  { %1588 = vsyncpa [#allocation8], 1 }
 0x446   :  { %1589 = vsyncpa [#allocation11], 1 }
 0x447   :  { %1590 = vsyncpa [#allocation14], 1 }

</bundles_post_ra>
